<compile_context>
chip_gen: v7x
topology: tpu7x:2x2x1
jax: 0.10.0
libtpu: 0.0.40
codegen_flags: <defaults>
</compile_context>

<pallas_src>
import functools

import jax
import jax.numpy as jnp
from jax import lax
from jax.experimental import pallas as pl
from jax.experimental.pallas import tpu as pltpu


# ----------------------------------------------------------------------------
# In-kernel math helpers
# ----------------------------------------------------------------------------
def _erf_approx(x):
    # PyTorch nn.GELU() uses exact erf; lax.erf lowering inside Mosaic is not
    # guaranteed, so use the Abramowitz-Stegun 7.1.26 polynomial
    # (|err| < 1.5e-7) built from supported elementwise ops.  The divide goes
    # to the EUP (approx reciprocal) — VALU is the binding unit in stage 2.
    a1, a2, a3, a4, a5 = 0.254829592, -0.284496736, 1.421413741, -1.453152027, 1.061405429
    p = 0.3275911
    s = jnp.sign(x)
    ax = jnp.abs(x)
    t = pl.reciprocal(1.0 + p * ax, approx=True)
    poly = ((((a5 * t + a4) * t + a3) * t + a2) * t + a1) * t
    return s * (1.0 - poly * jnp.exp(-ax * ax))


def _gelu(x):
    # Exact (erf-based) GELU, matching nn.GELU() default.
    return 0.5 * x * (1.0 + _erf_approx(x * 0.7071067811865476))


# ----------------------------------------------------------------------------
# Stage 1: f = Linear(dim, 2*dim + L + 1), emitted as lane-aligned q/ctx/gates
# ----------------------------------------------------------------------------
def _fused_f_kernel(x_ref, wq_ref, wc_ref, wg_ref, bq_ref, bc_ref, bg_ref,
                    q_ref, c_ref, g_ref):
    x = x_ref[...]                                           # (TM, C) bf16
    q = jnp.dot(x, wq_ref[...], preferred_element_type=jnp.float32) + bq_ref[...]
    c = jnp.dot(x, wc_ref[...], preferred_element_type=jnp.float32) + bc_ref[...]
    g = jnp.dot(x, wg_ref[...], preferred_element_type=jnp.float32) + bg_ref[...]
    q_ref[...] = q.astype(q_ref.dtype)
    c_ref[...] = c.astype(c_ref.dtype)
    g_ref[...] = g.astype(g_ref.dtype)


# ----------------------------------------------------------------------------
# Stage 2: depthwise focal convs + gating + global context (per image)
# ----------------------------------------------------------------------------
def _focal_conv_kernel(kernel_sizes, ctx_ref, gates_ref, *rest):
    L = len(kernel_sizes)
    focal_refs = rest[:L]
    out_ref = rest[L]
    pad_ref = rest[L + 1]                                    # zero-halo conv scratch

    _, H, W, C = ctx_ref.shape
    P = max(kernel_sizes) // 2
    Wp = W + 2 * P

    # Zero only the 4 halo-border slabs: the interior is fully rewritten every
    # level and the border is never written.  (Not relying on cross-grid-step
    # scratch persistence keeps this correct under megacore "parallel" splits.)
    if P > 0:
        pad_ref[0:P, :, :] = jnp.zeros((P, Wp, C), jnp.float32)
        pad_ref[P + H:P + H + P, :, :] = jnp.zeros((P, Wp, C), jnp.float32)
        pad_ref[P:P + H, 0:P, :] = jnp.zeros((H, P, C), jnp.float32)
        pad_ref[P:P + H, P + W:P + W + P, :] = jnp.zeros((H, P, C), jnp.float32)

    ctx = ctx_ref[0].astype(jnp.float32)                     # (H, W, C)
    gates = gates_ref[0]                                     # (H, W, L+1) f32

    ctx_all = jnp.zeros((H, W, C), jnp.float32)
    for l, k in enumerate(kernel_sizes):
        p = k // 2
        pad_ref[P:P + H, P:P + W, :] = ctx                   # interior write; halo stays 0
        wt = focal_refs[l][...]                              # (K*K, C)
        acc = jnp.zeros((H, W, C), jnp.float32)
        for i in range(k):                                   # static unroll: K*K MACs
            for j in range(k):
                oi = P - p + i
                oj = P - p + j
                # Per-tap ref slice (static offsets): no full padded slab live
                # value, no per-tap roll / iota / select masks.
                acc = acc + pad_ref[oi:oi + H, oj:oj + W, :] * wt[i * k + j]
        ctx = _gelu(acc)
        ctx_all = ctx_all + ctx * gates[:, :, l:l + 1]

    # Global context: GELU(mean over H, W) of the last-level ctx, gated.
    ctx_global = _gelu(jnp.mean(jnp.mean(ctx, axis=0, keepdims=True),
                                axis=1, keepdims=True))      # (1, 1, C)
    ctx_all = ctx_all + ctx_global * gates[:, :, L:L + 1]
    out_ref[0] = ctx_all.astype(out_ref.dtype)


# ----------------------------------------------------------------------------
# Stage 3: h (1x1 conv) + q * modulator + proj  (row-tiled MXU stage)
# ----------------------------------------------------------------------------
def _mod_proj_kernel(q_ref, ctx_ref, wh_ref, bh_ref, wp_ref, bp_ref, out_ref):
    mod = jnp.dot(ctx_ref[...], wh_ref[...],
                  preferred_element_type=jnp.float32) + bh_ref[...]
    xq = q_ref[...].astype(jnp.float32) * mod
    # proj Linear(dim, dim); proj_drop(p=0) is identity.
    out = jnp.dot(xq.astype(jnp.bfloat16), wp_ref[...],
                  preferred_element_type=jnp.float32) + bp_ref[...]
    out_ref[...] = out.astype(out_ref.dtype)


# ----------------------------------------------------------------------------
# Wrapper: parameter splitting + three pallas_calls
# ----------------------------------------------------------------------------
def _row_tile(n):
    # Large lane-dense row tiles; cdiv grids mask the ragged last block.
    if n >= 1024:
        return 1024
    if n >= 512:
        return 512
    return n          # full-extent block (allowed even if not a multiple of 8)


def focal_modulation_forward(x, params, kernel_sizes):
    B, H, W, C = x.shape
    L = len(kernel_sizes)
    for k in kernel_sizes:
        assert k % 2 == 1, "even kernel sizes do not match PyTorch padding=K//2"
    G = L + 1
    BHW = B * H * W
    TM = _row_tile(BHW)
    n_row_blocks = pl.cdiv(BHW, TM)

    # Split f = Linear(dim, 2*dim + L + 1) into lane-aligned segments.
    wf, bf = params["wf"], params["bf"]
    wq = wf[:, :C].astype(jnp.bfloat16)
    wc = wf[:, C:2 * C].astype(jnp.bfloat16)
    wg = wf[:, 2 * C:].astype(jnp.bfloat16)
    bq = bf[:C].reshape(1, C)
    bc = bf[C:2 * C].reshape(1, C)
    bg = bf[2 * C:].reshape(1, G)

    x2d = x.reshape(BHW, C).astype(jnp.bfloat16)

    st1_cost = pl.CostEstimate(
        flops=2 * BHW * C * (2 * C + G),
        transcendentals=0,
        bytes_accessed=(BHW * C * 2 + C * (2 * C + G) * 2 + (2 * C + G) * 4
                        + BHW * (2 * C * 2 + G * 4)),
    )
    q2d, ctx2d, gates2d = pl.pallas_call(
        _fused_f_kernel,
        out_shape=(jax.ShapeDtypeStruct((BHW, C), jnp.bfloat16),
                   jax.ShapeDtypeStruct((BHW, C), jnp.bfloat16),
                   jax.ShapeDtypeStruct((BHW, G), jnp.float32)),
        grid=(n_row_blocks,),
        in_specs=[pl.BlockSpec((TM, C), lambda i: (i, 0)),
                  pl.BlockSpec((C, C), lambda i: (0, 0)),
                  pl.BlockSpec((C, C), lambda i: (0, 0)),
                  pl.BlockSpec((C, G), lambda i: (0, 0)),
                  pl.BlockSpec((1, C), lambda i: (0, 0)),
                  pl.BlockSpec((1, C), lambda i: (0, 0)),
                  pl.BlockSpec((1, G), lambda i: (0, 0))],
        out_specs=[pl.BlockSpec((TM, C), lambda i: (i, 0)),
                   pl.BlockSpec((TM, C), lambda i: (i, 0)),
                   pl.BlockSpec((TM, G), lambda i: (i, 0))],
        compiler_params=pltpu.CompilerParams(
            dimension_semantics=("parallel",),
            vmem_limit_bytes=32 * 1024 * 1024),
        cost_estimate=st1_cost,
    )(x2d, wq, wc, wg, bq, bc, bg)

    ctx4 = ctx2d.reshape(B, H, W, C)                         # row-major, free
    gates4 = gates2d.reshape(B, H, W, G)

    focal_ws = [w.reshape(k * k, C) for w, k in zip(params["wfocal"], kernel_sizes)]
    P = max(kernel_sizes) // 2

    def full_spec(a):
        nd = a.ndim
        return pl.BlockSpec(a.shape, lambda b, _nd=nd: (0,) * _nd)

    taps = sum(k * k for k in kernel_sizes)
    st2_cost = pl.CostEstimate(
        flops=B * H * W * C * (2 * taps + 4 * L + 8),
        transcendentals=B * H * W * C * 2 * (L + 1),
        bytes_accessed=(B * H * W * (C * 2 + G * 4 + C * 2) + taps * C * 4),
    )
    kernel2 = functools.partial(_focal_conv_kernel, tuple(kernel_sizes))
    ctx_all = pl.pallas_call(
        kernel2,
        out_shape=jax.ShapeDtypeStruct((B, H, W, C), jnp.bfloat16),
        grid=(B,),
        in_specs=([pl.BlockSpec((1, H, W, C), lambda b: (b, 0, 0, 0)),
                   pl.BlockSpec((1, H, W, G), lambda b: (b, 0, 0, 0))]
                  + [full_spec(w) for w in focal_ws]),
        out_specs=pl.BlockSpec((1, H, W, C), lambda b: (b, 0, 0, 0)),
        scratch_shapes=[pltpu.VMEM((H + 2 * P, W + 2 * P, C), jnp.float32)],
        compiler_params=pltpu.CompilerParams(
            dimension_semantics=("parallel",),
            vmem_limit_bytes=32 * 1024 * 1024),
        cost_estimate=st2_cost,
    )(ctx4, gates4, *focal_ws)

    # Stage 3: h (1x1 conv) + modulation + proj, row-tiled over BHW.
    wh = params["wh"].astype(jnp.bfloat16)
    bh = params["bh"].reshape(1, C)
    wp = params["wp"].astype(jnp.bfloat16)
    bp = params["bp"].reshape(1, C)
    ctx_all2d = ctx_all.reshape(BHW, C)

    st3_cost = pl.CostEstimate(
        flops=4 * BHW * C * C + 3 * BHW * C,
        transcendentals=0,
        bytes_accessed=BHW * C * (2 + 2 + 4) + 2 * C * C * 2 + 2 * C * 4,
    )
    out2d = pl.pallas_call(
        _mod_proj_kernel,
        out_shape=jax.ShapeDtypeStruct((BHW, C), x.dtype),
        grid=(n_row_blocks,),
        in_specs=[pl.BlockSpec((TM, C), lambda i: (i, 0)),
                  pl.BlockSpec((TM, C), lambda i: (i, 0)),
                  pl.BlockSpec((C, C), lambda i: (0, 0)),
                  pl.BlockSpec((1, C), lambda i: (0, 0)),
                  pl.BlockSpec((C, C), lambda i: (0, 0)),
                  pl.BlockSpec((1, C), lambda i: (0, 0))],
        out_specs=pl.BlockSpec((TM, C), lambda i: (i, 0)),
        compiler_params=pltpu.CompilerParams(
            dimension_semantics=("parallel",),
            vmem_limit_bytes=32 * 1024 * 1024),
        cost_estimate=st3_cost,
    )(q2d, ctx_all2d, wh, bh, wp, bp)

    return out2d.reshape(B, H, W, C)


# ----------------------------------------------------------------------------
# Deterministic parameter construction (mirrors FocalModulation.__init__ shapes)
# ----------------------------------------------------------------------------
def init_params(key, dim, focal_window, focal_level, focal_factor=2):
    kernel_sizes = [focal_factor * k + focal_window for k in range(focal_level)]
    keys = jax.random.split(key, 6 + focal_level)
    s = 1.0 / (dim ** 0.5)
    params = {
        # nn.Linear(dim, 2*dim + L + 1): stored already transposed (in, out).
        "wf": jax.random.normal(keys[0], (dim, 2 * dim + focal_level + 1), jnp.float32) * s,
        "bf": jax.random.normal(keys[1], (2 * dim + focal_level + 1,), jnp.float32) * 0.1,
        # nn.Conv2d(dim, dim, 1) as (in, out) matrix + bias.
        "wh": jax.random.normal(keys[2], (dim, dim), jnp.float32) * s,
        "bh": jax.random.normal(keys[3], (dim,), jnp.float32) * 0.1,
        # nn.Linear(dim, dim)
        "wp": jax.random.normal(keys[4], (dim, dim), jnp.float32) * s,
        "bp": jax.random.normal(keys[5], (dim,), jnp.float32) * 0.1,
        # depthwise focal convs: (K, K, C) with wt[i, j, c] == torch weight[c, 0, i, j]
        "wfocal": [
            jax.random.normal(keys[6 + l], (k, k, dim), jnp.float32) * (1.0 / k)
            for l, k in enumerate(kernel_sizes)
        ],
    }
    return params, kernel_sizes


# ----------------------------------------------------------------------------
# Pure-JAX f32 reference (matches the PyTorch forward, NHWC)
# ----------------------------------------------------------------------------
def _gelu_ref(x):
    return 0.5 * x * (1.0 + lax.erf(x * 0.7071067811865476))


def reference(x, params, kernel_sizes):
    B, H, W, C = x.shape
    L = len(kernel_sizes)
    xf = x @ params["wf"] + params["bf"]
    q, ctx, gates = xf[..., :C], xf[..., C:2 * C], xf[..., 2 * C:]
    ctx_all = jnp.zeros_like(q)
    for l in range(L):
        wt = params["wfocal"][l][:, :, None, :]                    # HWIO, I=1
        ctx = lax.conv_general_dilated(
            ctx, wt, window_strides=(1, 1), padding="SAME",
            feature_group_count=C,
            dimension_numbers=("NHWC", "HWIO", "NHWC"))
        ctx = _gelu_ref(ctx)
        ctx_all = ctx_all + ctx * gates[..., l:l + 1]
    ctx_global = _gelu_ref(jnp.mean(jnp.mean(ctx, axis=1, keepdims=True),
                                    axis=2, keepdims=True))
    ctx_all = ctx_all + ctx_global * gates[..., L:L + 1]
    modulator = ctx_all @ params["wh"] + params["bh"]
    x_out = q * modulator
    return x_out @ params["wp"] + params["bp"]


if __name__ == "__main__":
    B, H, W, dim = 2, 16, 16, 32
    focal_window, focal_level = 3, 2

    key = jax.random.PRNGKey(0)
    kx, kp = jax.random.split(key)
    x = jax.random.normal(kx, (B, H, W, dim), jnp.float32)
    params, kernel_sizes = init_params(kp, dim, focal_window, focal_level)

    out = focal_modulation_forward(x, params, kernel_sizes)
    out = jax.block_until_ready(out)

    ref = reference(x, params, kernel_sizes)
    assert out.shape == (B, H, W, dim)
    max_err = float(jnp.max(jnp.abs(out - ref)))
    scale = float(jnp.max(jnp.abs(ref)))
    # bf16 MXU operands and bf16 stage-boundary activations => looser tolerance
    # than a pure-f32 path, but far below O(scale) errors from structural bugs.
    assert max_err <= 3e-2 * max(1.0, scale), f"mismatch vs reference: {max_err} (scale {scale})"

    print("KERNEL_OK")
</pallas_src>

<mosaic_0001>
module attributes {stable_mosaic.version = 11 : i64} {
  func.func @_fused_f_kernel(%arg0: i32, %arg1: memref<512x32xbf16, #tpu.memory_space<vmem>>, %arg2: memref<32x32xbf16, #tpu.memory_space<vmem>>, %arg3: memref<32x32xbf16, #tpu.memory_space<vmem>>, %arg4: memref<32x3xbf16, #tpu.memory_space<vmem>>, %arg5: memref<1x32xf32, #tpu.memory_space<vmem>>, %arg6: memref<1x32xf32, #tpu.memory_space<vmem>>, %arg7: memref<1x3xf32, #tpu.memory_space<vmem>>, %arg8: memref<512x32xbf16, #tpu.memory_space<vmem>>, %arg9: memref<512x32xbf16, #tpu.memory_space<vmem>>, %arg10: memref<512x3xf32, #tpu.memory_space<vmem>>) attributes {dimension_semantics = [#tpu.dimension_semantics<parallel>], iteration_bounds = array<i64: 1>, scalar_prefetch = 0 : i64, scratch_operands = 0 : i64, tpu.core_type = #tpu.core_type<tc>, window_params = [{transform_indices = @transform_0, window_bounds = array<i64: 512, 32>}, {pipeline_mode = #tpu.pipeline_mode<synchronous>, transform_indices = @transform_1, window_bounds = array<i64: 32, 32>}, {pipeline_mode = #tpu.pipeline_mode<synchronous>, transform_indices = @transform_2, window_bounds = array<i64: 32, 32>}, {pipeline_mode = #tpu.pipeline_mode<synchronous>, transform_indices = @transform_3, window_bounds = array<i64: 32, 3>}, {pipeline_mode = #tpu.pipeline_mode<synchronous>, transform_indices = @transform_4, window_bounds = array<i64: 1, 32>}, {pipeline_mode = #tpu.pipeline_mode<synchronous>, transform_indices = @transform_5, window_bounds = array<i64: 1, 32>}, {pipeline_mode = #tpu.pipeline_mode<synchronous>, transform_indices = @transform_6, window_bounds = array<i64: 1, 3>}, {transform_indices = @transform_7, window_bounds = array<i64: 512, 32>}, {transform_indices = @transform_8, window_bounds = array<i64: 512, 32>}, {transform_indices = @transform_9, window_bounds = array<i64: 512, 3>}]} {
    %c0 = arith.constant 0 : index
    %c0_0 = arith.constant 0 : index
    %0 = vector.load %arg1[%c0, %c0_0] : memref<512x32xbf16, #tpu.memory_space<vmem>>, vector<512x32xbf16>
    %c0_1 = arith.constant 0 : index
    %c0_2 = arith.constant 0 : index
    %1 = vector.load %arg2[%c0_1, %c0_2] : memref<32x32xbf16, #tpu.memory_space<vmem>>, vector<32x32xbf16>
    %cst = arith.constant dense<0.000000e+00> : vector<512x32xf32>
    %2 = tpu.matmul %0, %1, %cst {dimension_numbers = #tpu.dot_dimension_numbers<[1], [0], [0], [1], [0, 0, 1, 1], [], []>} : vector<512x32xbf16>, vector<32x32xbf16>, vector<512x32xf32> -> vector<512x32xf32>
    %c0_3 = arith.constant 0 : index
    %c0_4 = arith.constant 0 : index
    %3 = vector.load %arg5[%c0_3, %c0_4] : memref<1x32xf32, #tpu.memory_space<vmem>>, vector<1x32xf32>
    %4 = vector.broadcast %3 : vector<1x32xf32> to vector<512x32xf32>
    %5 = arith.addf %2, %4 : vector<512x32xf32>
    %c0_5 = arith.constant 0 : index
    %c0_6 = arith.constant 0 : index
    %6 = vector.load %arg3[%c0_5, %c0_6] : memref<32x32xbf16, #tpu.memory_space<vmem>>, vector<32x32xbf16>
    %cst_7 = arith.constant dense<0.000000e+00> : vector<512x32xf32>
    %7 = tpu.matmul %0, %6, %cst_7 {dimension_numbers = #tpu.dot_dimension_numbers<[1], [0], [0], [1], [0, 0, 1, 1], [], []>} : vector<512x32xbf16>, vector<32x32xbf16>, vector<512x32xf32> -> vector<512x32xf32>
    %c0_8 = arith.constant 0 : index
    %c0_9 = arith.constant 0 : index
    %8 = vector.load %arg6[%c0_8, %c0_9] : memref<1x32xf32, #tpu.memory_space<vmem>>, vector<1x32xf32>
    %9 = vector.broadcast %8 : vector<1x32xf32> to vector<512x32xf32>
    %10 = arith.addf %7, %9 : vector<512x32xf32>
    %c0_10 = arith.constant 0 : index
    %c0_11 = arith.constant 0 : index
    %11 = vector.load %arg4[%c0_10, %c0_11] : memref<32x3xbf16, #tpu.memory_space<vmem>>, vector<32x3xbf16>
    %cst_12 = arith.constant dense<0.000000e+00> : vector<512x3xf32>
    %12 = tpu.matmul %0, %11, %cst_12 {dimension_numbers = #tpu.dot_dimension_numbers<[1], [0], [0], [1], [0, 0, 1, 1], [], []>} : vector<512x32xbf16>, vector<32x3xbf16>, vector<512x3xf32> -> vector<512x3xf32>
    %c0_13 = arith.constant 0 : index
    %c0_14 = arith.constant 0 : index
    %13 = vector.load %arg7[%c0_13, %c0_14] : memref<1x3xf32, #tpu.memory_space<vmem>>, vector<1x3xf32>
    %14 = vector.broadcast %13 : vector<1x3xf32> to vector<512x3xf32>
    %15 = arith.addf %12, %14 : vector<512x3xf32>
    %16 = arith.truncf %5 : vector<512x32xf32> to vector<512x32xbf16>
    %c0_15 = arith.constant 0 : index
    %c0_16 = arith.constant 0 : index
    %17 = vector.load %arg8[%c0_15, %c0_16] : memref<512x32xbf16, #tpu.memory_space<vmem>>, vector<512x32xbf16>
    tpu.vector_store %arg8[%c0_15, %c0_16], %16 {strides = array<i32>} : memref<512x32xbf16, #tpu.memory_space<vmem>>, vector<512x32xbf16>,
    %18 = arith.truncf %10 : vector<512x32xf32> to vector<512x32xbf16>
    %c0_17 = arith.constant 0 : index
    %c0_18 = arith.constant 0 : index
    %19 = vector.load %arg9[%c0_17, %c0_18] : memref<512x32xbf16, #tpu.memory_space<vmem>>, vector<512x32xbf16>
    tpu.vector_store %arg9[%c0_17, %c0_18], %18 {strides = array<i32>} : memref<512x32xbf16, #tpu.memory_space<vmem>>, vector<512x32xbf16>,
    %c0_19 = arith.constant 0 : index
    %c0_20 = arith.constant 0 : index
    %20 = vector.load %arg10[%c0_19, %c0_20] : memref<512x3xf32, #tpu.memory_space<vmem>>, vector<512x3xf32>
    tpu.vector_store %arg10[%c0_19, %c0_20], %15 {strides = array<i32>} : memref<512x3xf32, #tpu.memory_space<vmem>>, vector<512x3xf32>,
    return
  }
  func.func @transform_0(%arg0: i32) -> (i32, i32) {
    %c0_i32 = arith.constant 0 : i32
    %c0_i32_0 = arith.constant 0 : i32
    return %arg0, %c0_i32 : i32, i32
  }
  func.func @transform_1(%arg0: i32) -> (i32, i32) {
    %c0_i32 = arith.constant 0 : i32
    %c0_i32_0 = arith.constant 0 : i32
    %c0_i32_1 = arith.constant 0 : i32
    return %c0_i32, %c0_i32_0 : i32, i32
  }
  func.func @transform_2(%arg0: i32) -> (i32, i32) {
    %c0_i32 = arith.constant 0 : i32
    %c0_i32_0 = arith.constant 0 : i32
    %c0_i32_1 = arith.constant 0 : i32
    return %c0_i32, %c0_i32_0 : i32, i32
  }
  func.func @transform_3(%arg0: i32) -> (i32, i32) {
    %c0_i32 = arith.constant 0 : i32
    %c0_i32_0 = arith.constant 0 : i32
    %c0_i32_1 = arith.constant 0 : i32
    return %c0_i32, %c0_i32_0 : i32, i32
  }
  func.func @transform_4(%arg0: i32) -> (i32, i32) {
    %c0_i32 = arith.constant 0 : i32
    %c0_i32_0 = arith.constant 0 : i32
    %c0_i32_1 = arith.constant 0 : i32
    return %c0_i32, %c0_i32_0 : i32, i32
  }
  func.func @transform_5(%arg0: i32) -> (i32, i32) {
    %c0_i32 = arith.constant 0 : i32
    %c0_i32_0 = arith.constant 0 : i32
    %c0_i32_1 = arith.constant 0 : i32
    return %c0_i32, %c0_i32_0 : i32, i32
  }
  func.func @transform_6(%arg0: i32) -> (i32, i32) {
    %c0_i32 = arith.constant 0 : i32
    %c0_i32_0 = arith.constant 0 : i32
    %c0_i32_1 = arith.constant 0 : i32
    return %c0_i32, %c0_i32_0 : i32, i32
  }
  func.func @transform_7(%arg0: i32) -> (i32, i32) {
    %c0_i32 = arith.constant 0 : i32
    %c0_i32_0 = arith.constant 0 : i32
    return %arg0, %c0_i32 : i32, i32
  }
  func.func @transform_8(%arg0: i32) -> (i32, i32) {
    %c0_i32 = arith.constant 0 : i32
    %c0_i32_0 = arith.constant 0 : i32
    return %arg0, %c0_i32 : i32, i32
  }
  func.func @transform_9(%arg0: i32) -> (i32, i32) {
    %c0_i32 = arith.constant 0 : i32
    %c0_i32_0 = arith.constant 0 : i32
    return %arg0, %c0_i32 : i32, i32
  }
}

</mosaic_0001>

<bundles_post_ra>
// kernel: tpu_custom_call.1
= control target key start
LH: loop header
LB: loop body
LE: loop exit
PB: predicated region body
PF: predicated region fallthrough
CT: control target
= control target key end

     0   :  { %vm277_vm0 = vcmask 261120   ;;  %vm1543_vm1 = vcmask 257024   ;;  %vm1928_vm2 = vcmask 23552   ;;  %s4086_s1 = inlined_call_operand.vmem [shape: bf16[32,32], index: 1, kind: input, shape index: {}]   ;;  %s4087_s0 = inlined_call_operand.vmem [shape: bf16[512,32], index: 0, kind: input, shape index: {}]   ;;  %s4088_s2 = inlined_call_operand.vmem [shape: bf16[32,32], index: 2, kind: input, shape index: {}]   ;;  %s4089_s3 = inlined_call_operand.vmem [shape: bf16[32,3], index: 3, kind: input, shape index: {}]   ;;  %s4090_s4 = inlined_call_operand.vmem [shape: f32[1,32], index: 4, kind: input, shape index: {}]   ;;  %s4091_s7 = inlined_call_operand.vmem [shape: bf16[512,32], index: 7, kind: output, shape index: {0}]   ;;  %s4092_s5 = inlined_call_operand.vmem [shape: f32[1,32], index: 5, kind: input, shape index: {}]   ;;  %s4093_s6 = inlined_call_operand.vmem [shape: f32[1,3], index: 6, kind: input, shape index: {}]   ;;  %s4094_s9 = inlined_call_operand.vmem [shape: f32[512,3], index: 9, kind: output, shape index: {2}]   ;;  %s4095_s8 = inlined_call_operand.vmem [shape: bf16[512,32], index: 8, kind: output, shape index: {1}]  }
   0x1   :  { %v2708_v0 = vld [vmem:[%s4086_s1] sm:$0xff]   ;;  %v2709_v1 = vld [vmem:[%s4086_s1 + $0x8] sm:$0xff]   ;;  %v2835_v8 = vld [vmem:[%s4087_s0 + $0x10] sm:$0xff]  }
   0x2   :  { %2500 = vmatprep.subr.bf16.mxu0 %v2708_v0  ;;  %2704 = vmatprep.subr.bf16.mxu1 %v2708_v0  ;;  %v2805_v2 = vld [vmem:[%s4087_s0] sm:$0xff]   ;;  %v2815_v4 = vld [vmem:[%s4087_s0 + $0x8] sm:$0xff]   ;;  %v2840_v9 = vld [vmem:[%s4087_s0 + $0x90] sm:$0xff]  }
   0x3   :  { %2501 = vmatpush3.bf16.msra.mxu0 %v2708_v0  ;;  %2706 = vmatpush3.bf16.msra.mxu1 %v2708_v0  ;;  %v2810_v3 = vld [vmem:[%s4087_s0 + $0x80] sm:$0xff]   ;;  %v2824_v5 = vld [vmem:[%s4087_s0 + $0x88] sm:$0xff]   ;;  %v2853_v10 = vld [vmem:[%s4087_s0 + $0x18] sm:$0xff]  }
   0x4   :  { %2502 = vmatprep.subr.bf16.mxu0 %v2709_v1  ;;  %2705 = vmatprep.subr.bf16.mxu1 %v2709_v1  ;;  %v2714_v6 = vld [vmem:[%s4088_s2] sm:$0xff]   ;;  %v2858_v11 = vld [vmem:[%s4087_s0 + $0x98] sm:$0xff]   ;;  %v2722_v14 = vld [vmem:[%s4087_s0 + $0x28] sm:$0xff]  }
   0x5   :  { %2504 = vmatprep.mubr.msk.bf16.mxu0 %vm277_vm0, %v2805_v2  ;;  %2536 = vmatprep.mubr.msk.bf16.mxu1 %vm277_vm0, %v2810_v3  ;;  %v2715_v7 = vld [vmem:[%s4089_s3] sm:$0xff]   ;;  %v2884_v15 = vld [vmem:[%s4087_s0 + $0xa8] sm:$0xff]   ;;  %v2724_v16 = vld [vmem:[%s4087_s0 + $0x30] sm:$0xff]  }
   0x6   :  { %v2863_v12 = vld [vmem:[%s4087_s0 + $0x20] sm:$0xff]   ;;  %v2892_v17 = vld [vmem:[%s4087_s0 + $0xb0] sm:$0xff]   ;;  %v2732_v18 = vld [vmem:[%s4088_s2 + $0x8] sm:$0xff]  }
   0x7   :  { %2503 = vmatpush3.bf16.msra.mxu0 %v2709_v1  ;;  %2707 = vmatpush3.bf16.msra.mxu1 %v2709_v1  ;;  %v2868_v13 = vld [vmem:[%s4087_s0 + $0xa0] sm:$0xff]   ;;  %v2733_v19 = vld [vmem:[%s4089_s3 + $0x8] sm:$0xff]   ;;  %v2726_v20 = vld [vmem:[%s4087_s0 + $0x38] sm:$0xff]  }
   0x8   :  { %2568 = vmatprep.subr.bf16.mxu1 %v2714_v6  ;;  %2636 = vmatprep.subr.bf16.mxu0 %v2715_v7  ;;  %v2912_v21 = vld [vmem:[%s4087_s0 + $0xb8] sm:$0xff]   ;;  %v2728_v22 = vld [vmem:[%s4087_s0 + $0x40] sm:$0xff]   ;;  %v2730_v24 = vld [vmem:[%s4087_s0 + $0x48] sm:$0xff]  }
   0x9   :  { %v2920_v23 = vld [vmem:[%s4087_s0 + $0xc0] sm:$0xff]   ;;  %v2934_v25 = vld [vmem:[%s4087_s0 + $0xc8] sm:$0xff]   ;;  %v2734_v26 = vld [vmem:[%s4087_s0 + $0x50] sm:$0xff]  }
   0xa   :  { %2505 = vmatmul.mubr.msk.bf16.vlgmr.msra.gmra.mrb[0].mxu0 %vm277_vm0, %v2815_v4  ;;  %2537 = vmatmul.mubr.msk.bf16.vlgmr.msra.gmra.mrb[0].mxu1 %vm277_vm0, %v2824_v5  ;;  %v2942_v27 = vld [vmem:[%s4087_s0 + $0xd0] sm:$0xff]   ;;  %v2736_v28 = vld [vmem:[%s4087_s0 + $0x58] sm:$0xff]   ;;  %v2738_v30 = vld [vmem:[%s4087_s0 + $0x60] sm:$0xff]  }
   0xb   :  { %2569 = vmatpush3.bf16.msra.mxu1 %v2714_v6  ;;  %2637 = vmatpush3.bf16.msra.mxu0 %v2715_v7  ;;  %v2956_v29 = vld [vmem:[%s4087_s0 + $0xd8] sm:$0xff]   ;;  %v2964_v31 = vld [vmem:[%s4087_s0 + $0xe0] sm:$0xff]   ;;  %v2740_v32 = vld [vmem:[%s4087_s0 + $0x68] sm:$0xff]  }
   0xc   :  { %2508 = vmatprep.mubr.msk.bf16.mxu0 %vm277_vm0, %v2835_v8  ;;  %2540 = vmatprep.mubr.msk.bf16.mxu1 %vm277_vm0, %v2840_v9  ;;  %v2978_v33 = vld [vmem:[%s4087_s0 + $0xe8] sm:$0xff]   ;;  %v2742_v34 = vld [vmem:[%s4087_s0 + $0x70] sm:$0xff]   ;;  %v2744_v36 = vld [vmem:[%s4087_s0 + $0x78] sm:$0xff]  }
   0xd   :  { %2570 = vmatprep.subr.bf16.mxu1 %v2732_v18  ;;  %2638 = vmatprep.subr.bf16.mxu0 %v2733_v19  ;;  %v2986_v35 = vld [vmem:[%s4087_s0 + $0xf0] sm:$0xff]   ;;  %v3000_v37 = vld [vmem:[%s4087_s0 + $0xf8] sm:$0xff]   ;;  %v3114_v38 = vld [vmem:[%s4090_s4] ss:$0 sm:$0xff] }
   0xf   :  { %2571 = vmatpush3.bf16.msra.mxu1 %v2732_v18  ;;  %2639 = vmatpush3.bf16.msra.mxu0 %v2733_v19 }
  0x12   :  { %2509 = vmatmul.mubr.msk.bf16.gmra.mrb[4].mxu0 %vm277_vm0, %v2853_v10  ;;  %2541 = vmatmul.mubr.msk.bf16.gmra.mrb[4].mxu1 %vm277_vm0, %v2858_v11 }
  0x13   :  { %2512 = vmatprep.mubr.msk.bf16.mxu0 %vm277_vm0, %v2863_v12  ;;  %2544 = vmatprep.mubr.msk.bf16.mxu1 %vm277_vm0, %v2868_v13 }
  0x1a   :  { %2513 = vmatmul.mubr.msk.bf16.gmra.mrb[8].mxu0 %vm277_vm0, %v2722_v14  ;;  %2545 = vmatmul.mubr.msk.bf16.gmra.mrb[8].mxu1 %vm277_vm0, %v2884_v15 }
  0x1b   :  { %2516 = vmatprep.mubr.msk.bf16.mxu0 %vm277_vm0, %v2724_v16  ;;  %2548 = vmatprep.mubr.msk.bf16.mxu1 %vm277_vm0, %v2892_v17 }
  0x22   :  { %2517 = vmatmul.mubr.msk.bf16.gmra.mrb[12].mxu0 %vm277_vm0, %v2726_v20  ;;  %2549 = vmatmul.mubr.msk.bf16.gmra.mrb[12].mxu1 %vm277_vm0, %v2912_v21 }
  0x23   :  { %2520 = vmatprep.mubr.msk.bf16.mxu0 %vm277_vm0, %v2728_v22  ;;  %2552 = vmatprep.mubr.msk.bf16.mxu1 %vm277_vm0, %v2920_v23 }
  0x2a   :  { %2521 = vmatmul.mubr.msk.bf16.gmra.mrb[16].mxu0 %vm277_vm0, %v2730_v24  ;;  %2553 = vmatmul.mubr.msk.bf16.gmra.mrb[16].mxu1 %vm277_vm0, %v2934_v25 }
  0x2b   :  { %2524 = vmatprep.mubr.msk.bf16.mxu0 %vm277_vm0, %v2734_v26  ;;  %2556 = vmatprep.mubr.msk.bf16.mxu1 %vm277_vm0, %v2942_v27 }
  0x32   :  { %2525 = vmatmul.mubr.msk.bf16.gmra.mrb[20].mxu0 %vm277_vm0, %v2736_v28  ;;  %2557 = vmatmul.mubr.msk.bf16.gmra.mrb[20].mxu1 %vm277_vm0, %v2956_v29 }
  0x33   :  { %2528 = vmatprep.mubr.msk.bf16.mxu0 %vm277_vm0, %v2738_v30  ;;  %2560 = vmatprep.mubr.msk.bf16.mxu1 %vm277_vm0, %v2964_v31 }
  0x3a   :  { %2529 = vmatmul.mubr.msk.bf16.gmra.mrb[24].mxu0 %vm277_vm0, %v2740_v32  ;;  %2561 = vmatmul.mubr.msk.bf16.gmra.mrb[24].mxu1 %vm277_vm0, %v2978_v33 }
  0x3b   :  { %2532 = vmatprep.mubr.msk.bf16.mxu0 %vm277_vm0, %v2742_v34  ;;  %2564 = vmatprep.mubr.msk.bf16.mxu1 %vm277_vm0, %v2986_v35 }
  0x42   :  { %2533 = vmatmul.mubr.msk.bf16.gmra.mrb[28].mxu0 %vm277_vm0, %v2744_v36  ;;  %2565 = vmatmul.mubr.msk.bf16.gmra.mrb[28].mxu1 %vm277_vm0, %v3000_v37 }
  0x43   :  { %2572 = vmatprep.mubr.msk.bf16.mxu1 %vm277_vm0, %v2805_v2  ;;  %2640 = vmatprep.mubr.msk.bf16.mxu0 %vm277_vm0, %v2805_v2 }
  0x4a   :  { %2573 = vmatmul.mubr.msk.bf16.vlgmr.msra.gmra.mrb[32].mxu1 %vm277_vm0, %v2815_v4  ;;  %2641 = vmatmul.mubr.msk.bf16.vlgmr.msra.gmra.mrb[32].mxu0 %vm277_vm0, %v2815_v4 }
  0x4b   :  { %2576 = vmatprep.mubr.msk.bf16.mxu1 %vm277_vm0, %v2835_v8  ;;  %2644 = vmatprep.mubr.msk.bf16.mxu0 %vm277_vm0, %v2835_v8 }
  0x52   :  { %2577 = vmatmul.mubr.msk.bf16.gmra.mrb[36].mxu1 %vm277_vm0, %v2853_v10  ;;  %2645 = vmatmul.mubr.msk.bf16.gmra.mrb[36].mxu0 %vm277_vm0, %v2853_v10 }
  0x53   :  { %2580 = vmatprep.mubr.msk.bf16.mxu1 %vm277_vm0, %v2863_v12  ;;  %2648 = vmatprep.mubr.msk.bf16.mxu0 %vm277_vm0, %v2863_v12 }
  0x5a   :  { %2581 = vmatmul.mubr.msk.bf16.gmra.mrb[40].mxu1 %vm277_vm0, %v2722_v14  ;;  %2649 = vmatmul.mubr.msk.bf16.gmra.mrb[40].mxu0 %vm277_vm0, %v2722_v14 }
  0x5b   :  { %2584 = vmatprep.mubr.msk.bf16.mxu1 %vm277_vm0, %v2724_v16  ;;  %2652 = vmatprep.mubr.msk.bf16.mxu0 %vm277_vm0, %v2724_v16 }
  0x62   :  { %2585 = vmatmul.mubr.msk.bf16.gmra.mrb[44].mxu1 %vm277_vm0, %v2726_v20  ;;  %2653 = vmatmul.mubr.msk.bf16.gmra.mrb[44].mxu0 %vm277_vm0, %v2726_v20 }
  0x63   :  { %2588 = vmatprep.mubr.msk.bf16.mxu1 %vm277_vm0, %v2728_v22  ;;  %2656 = vmatprep.mubr.msk.bf16.mxu0 %vm277_vm0, %v2728_v22 }
  0x6a   :  { %2589 = vmatmul.mubr.msk.bf16.gmra.mrb[48].mxu1 %vm277_vm0, %v2730_v24  ;;  %2657 = vmatmul.mubr.msk.bf16.gmra.mrb[48].mxu0 %vm277_vm0, %v2730_v24 }
  0x6b   :  { %2592 = vmatprep.mubr.msk.bf16.mxu1 %vm277_vm0, %v2734_v26  ;;  %2660 = vmatprep.mubr.msk.bf16.mxu0 %vm277_vm0, %v2734_v26 }
  0x72   :  { %2593 = vmatmul.mubr.msk.bf16.gmra.mrb[52].mxu1 %vm277_vm0, %v2736_v28  ;;  %2661 = vmatmul.mubr.msk.bf16.gmra.mrb[52].mxu0 %vm277_vm0, %v2736_v28 }
  0x73   :  { %2596 = vmatprep.mubr.msk.bf16.mxu1 %vm277_vm0, %v2738_v30  ;;  %2664 = vmatprep.mubr.msk.bf16.mxu0 %vm277_vm0, %v2738_v30 }
  0x7a   :  { %2597 = vmatmul.mubr.msk.bf16.gmra.mrb[56].mxu1 %vm277_vm0, %v2740_v32  ;;  %2665 = vmatmul.mubr.msk.bf16.gmra.mrb[56].mxu0 %vm277_vm0, %v2740_v32 }
  0x7b   :  { %2600 = vmatprep.mubr.msk.bf16.mxu1 %vm277_vm0, %v2742_v34  ;;  %2668 = vmatprep.mubr.msk.bf16.mxu0 %vm277_vm0, %v2742_v34 }
  0x82   :  { %2601 = vmatmul.mubr.msk.bf16.gmra.mrb[60].mxu1 %vm277_vm0, %v2744_v36  ;;  %2669 = vmatmul.mubr.msk.bf16.gmra.mrb[60].mxu0 %vm277_vm0, %v2744_v36 }
  0x83   :  { %2604 = vmatprep.mubr.msk.bf16.mxu1 %vm277_vm0, %v2810_v3  ;;  %2672 = vmatprep.mubr.msk.bf16.mxu0 %vm277_vm0, %v2810_v3 }
  0x8a   :  { %2605 = vmatmul.mubr.msk.bf16.gmra.mrb[64].mxu1 %vm277_vm0, %v2824_v5  ;;  %2673 = vmatmul.mubr.msk.bf16.gmra.mrb[64].mxu0 %vm277_vm0, %v2824_v5 }
  0x8b   :  { %2608 = vmatprep.mubr.msk.bf16.mxu1 %vm277_vm0, %v2840_v9  ;;  %2676 = vmatprep.mubr.msk.bf16.mxu0 %vm277_vm0, %v2840_v9 }
  0x92   :  { %2609 = vmatmul.mubr.msk.bf16.gmra.mrb[68].mxu1 %vm277_vm0, %v2858_v11  ;;  %2677 = vmatmul.mubr.msk.bf16.gmra.mrb[68].mxu0 %vm277_vm0, %v2858_v11 }
  0x93   :  { %2612 = vmatprep.mubr.msk.bf16.mxu1 %vm277_vm0, %v2868_v13  ;;  %2680 = vmatprep.mubr.msk.bf16.mxu0 %vm277_vm0, %v2868_v13 }
  0x9a   :  { %2613 = vmatmul.mubr.msk.bf16.gmra.mrb[72].mxu1 %vm277_vm0, %v2884_v15  ;;  %2681 = vmatmul.mubr.msk.bf16.gmra.mrb[72].mxu0 %vm277_vm0, %v2884_v15 }
  0x9b   :  { %2616 = vmatprep.mubr.msk.bf16.mxu1 %vm277_vm0, %v2892_v17  ;;  %2684 = vmatprep.mubr.msk.bf16.mxu0 %vm277_vm0, %v2892_v17 }
  0xa2   :  { %2617 = vmatmul.mubr.msk.bf16.gmra.mrb[76].mxu1 %vm277_vm0, %v2912_v21  ;;  %2685 = vmatmul.mubr.msk.bf16.gmra.mrb[76].mxu0 %vm277_vm0, %v2912_v21 }
  0xa3   :  { %2620 = vmatprep.mubr.msk.bf16.mxu1 %vm277_vm0, %v2920_v23  ;;  %2688 = vmatprep.mubr.msk.bf16.mxu0 %vm277_vm0, %v2920_v23 }
  0xaa   :  { %2621 = vmatmul.mubr.msk.bf16.gmra.mrb[80].mxu1 %vm277_vm0, %v2934_v25  ;;  %2689 = vmatmul.mubr.msk.bf16.gmra.mrb[80].mxu0 %vm277_vm0, %v2934_v25 }
  0xab   :  { %2624 = vmatprep.mubr.msk.bf16.mxu1 %vm277_vm0, %v2942_v27  ;;  %2692 = vmatprep.mubr.msk.bf16.mxu0 %vm277_vm0, %v2942_v27 }
  0xb2   :  { %2625 = vmatmul.mubr.msk.bf16.gmra.mrb[84].mxu1 %vm277_vm0, %v2956_v29  ;;  %2693 = vmatmul.mubr.msk.bf16.gmra.mrb[84].mxu0 %vm277_vm0, %v2956_v29 }
  0xb3   :  { %2628 = vmatprep.mubr.msk.bf16.mxu1 %vm277_vm0, %v2964_v31  ;;  %2696 = vmatprep.mubr.msk.bf16.mxu0 %vm277_vm0, %v2964_v31 }
  0xba   :  { %2629 = vmatmul.mubr.msk.bf16.gmra.mrb[88].mxu1 %vm277_vm0, %v2978_v33  ;;  %2697 = vmatmul.mubr.msk.bf16.gmra.mrb[88].mxu0 %vm277_vm0, %v2978_v33 }
  0xbb   :  { %2632 = vmatprep.mubr.msk.bf16.mxu1 %vm277_vm0, %v2986_v35  ;;  %2700 = vmatprep.mubr.msk.bf16.mxu0 %vm277_vm0, %v2986_v35 }
  0xc2   :  { %2633 = vmatmul.mubr.msk.bf16.gmra.mrb[92].mxu1 %vm277_vm0, %v3000_v37  ;;  %2701 = vmatmul.mubr.msk.bf16.gmra.mrb[92].mxu0 %vm277_vm0, %v3000_v37 }
  0xdd   :  { %v2506_v39 = vpop.f32.mrb[0].mxu0  ;;  %v2538_v40 = vpop.f32.mrb[0].mxu1 }
  0xde   :  { %v417_v41 = vadd.f32 %v2506_v39, %v3114_v38  ;;  %v545_v42 = vadd.f32 %v2538_v40, %v3114_v38  ;;  %v408_v43 = vpop.f32.mrb[1].mxu0  ;;  %v536_v44 = vpop.f32.mrb[1].mxu1 }
  0xdf   :  { %v409_v45 = vadd.f32 %v3114_v38, %v408_v43  ;;  %v537_v46 = vadd.f32 %v3114_v38, %v536_v44  ;;  %v2507_v47 = vpop.f32.mrb[2].mxu0  ;;  %v2539_v48 = vpop.f32.mrb[2].mxu1 }
  0xe0   :  { %v2272_v49 = vpack.c.bf16 %v417_v41, %v417_v41  ;;  %v2304_v50 = vpack.c.bf16 %v545_v42, %v545_v42  ;;  %v420_v51 = vadd.f32 %v2507_v47, %v3114_v38  ;;  %v548_v52 = vadd.f32 %v2539_v48, %v3114_v38  ;;  %v411_v53 = vpop.f32.mrb[3].mxu0  ;;  %v539_v54 = vpop.f32.mrb[3].mxu1 }
  0xe1   :  { %v2270_v55 = vpack.c.bf16 %v409_v45, %v409_v45  ;;  %v2302_v56 = vpack.c.bf16 %v537_v46, %v537_v46  ;;  %v412_v57 = vadd.f32 %v3114_v38, %v411_v53  ;;  %v540_v58 = vadd.f32 %v3114_v38, %v539_v54 }
  0xe2   :  { %1546 = vst.msk [vmem:[%s4091_s7 + $0x8] sm:$0xf] %vm1543_vm1, %v2272_v49  ;;  %1578 = vst.msk [vmem:[%s4091_s7 + $0x88] sm:$0xf] %vm1543_vm1, %v2304_v50  ;;  %v2273_v59 = vpack.c.bf16 %v420_v51, %v420_v51  ;;  %v2305_v60 = vpack.c.bf16 %v548_v52, %v548_v52 }
  0xe3   :  { %1544 = vst.msk [vmem:[%s4091_s7] sm:$0xf] %vm1543_vm1, %v2270_v55  ;;  %1576 = vst.msk [vmem:[%s4091_s7 + $0x80] sm:$0xf] %vm1543_vm1, %v2302_v56  ;;  %v2271_v61 = vpack.c.bf16 %v412_v57, %v412_v57  ;;  %v2303_v62 = vpack.c.bf16 %v540_v58, %v540_v58 }
  0xe4   :  { %1547 = vst.msk [vmem:[%s4091_s7 + $0xc] sm:$0xf] %vm1543_vm1, %v2273_v59  ;;  %1579 = vst.msk [vmem:[%s4091_s7 + $0x8c] sm:$0xf] %vm1543_vm1, %v2305_v60 }
  0xe5   :  { %1545 = vst.msk [vmem:[%s4091_s7 + $0x4] sm:$0xf] %vm1543_vm1, %v2271_v61  ;;  %1577 = vst.msk [vmem:[%s4091_s7 + $0x84] sm:$0xf] %vm1543_vm1, %v2303_v62  ;;  %v2510_v63 = vpop.f32.mrb[4].mxu0  ;;  %v2542_v0 = vpop.f32.mrb[4].mxu1 }
  0xe6   :  { %v433_v1 = vadd.f32 %v2510_v63, %v3114_v38  ;;  %v561_v2 = vadd.f32 %v2542_v0, %v3114_v38  ;;  %v424_v3 = vpop.f32.mrb[5].mxu0  ;;  %v552_v4 = vpop.f32.mrb[5].mxu1 }
  0xe7   :  { %v425_v5 = vadd.f32 %v3114_v38, %v424_v3  ;;  %v553_v6 = vadd.f32 %v3114_v38, %v552_v4  ;;  %v2511_v7 = vpop.f32.mrb[6].mxu0  ;;  %v2543_v8 = vpop.f32.mrb[6].mxu1 }
  0xe8   :  { %v2276_v9 = vpack.c.bf16 %v433_v1, %v433_v1  ;;  %v2308_v10 = vpack.c.bf16 %v561_v2, %v561_v2  ;;  %v436_v11 = vadd.f32 %v2511_v7, %v3114_v38  ;;  %v564_v12 = vadd.f32 %v2543_v8, %v3114_v38  ;;  %v427_v13 = vpop.f32.mrb[7].mxu0  ;;  %v555_v14 = vpop.f32.mrb[7].mxu1 }
  0xe9   :  { %v2274_v15 = vpack.c.bf16 %v425_v5, %v425_v5  ;;  %v2306_v16 = vpack.c.bf16 %v553_v6, %v553_v6  ;;  %v428_v17 = vadd.f32 %v3114_v38, %v427_v13  ;;  %v556_v18 = vadd.f32 %v3114_v38, %v555_v14 }
  0xea   :  { %1550 = vst.msk [vmem:[%s4091_s7 + $0x18] sm:$0xf] %vm1543_vm1, %v2276_v9  ;;  %1582 = vst.msk [vmem:[%s4091_s7 + $0x98] sm:$0xf] %vm1543_vm1, %v2308_v10  ;;  %v2277_v19 = vpack.c.bf16 %v436_v11, %v436_v11  ;;  %v2309_v20 = vpack.c.bf16 %v564_v12, %v564_v12 }
  0xeb   :  { %1548 = vst.msk [vmem:[%s4091_s7 + $0x10] sm:$0xf] %vm1543_vm1, %v2274_v15  ;;  %1580 = vst.msk [vmem:[%s4091_s7 + $0x90] sm:$0xf] %vm1543_vm1, %v2306_v16  ;;  %v2275_v21 = vpack.c.bf16 %v428_v17, %v428_v17  ;;  %v2307_v22 = vpack.c.bf16 %v556_v18, %v556_v18 }
  0xec   :  { %1551 = vst.msk [vmem:[%s4091_s7 + $0x1c] sm:$0xf] %vm1543_vm1, %v2277_v19  ;;  %1583 = vst.msk [vmem:[%s4091_s7 + $0x9c] sm:$0xf] %vm1543_vm1, %v2309_v20 }
  0xed   :  { %1549 = vst.msk [vmem:[%s4091_s7 + $0x14] sm:$0xf] %vm1543_vm1, %v2275_v21  ;;  %1581 = vst.msk [vmem:[%s4091_s7 + $0x94] sm:$0xf] %vm1543_vm1, %v2307_v22  ;;  %v2514_v23 = vpop.f32.mrb[8].mxu0  ;;  %v2546_v24 = vpop.f32.mrb[8].mxu1 }
  0xee   :  { %v449_v25 = vadd.f32 %v2514_v23, %v3114_v38  ;;  %v577_v26 = vadd.f32 %v2546_v24, %v3114_v38  ;;  %v440_v27 = vpop.f32.mrb[9].mxu0  ;;  %v568_v28 = vpop.f32.mrb[9].mxu1 }
  0xef   :  { %v441_v29 = vadd.f32 %v3114_v38, %v440_v27  ;;  %v569_v30 = vadd.f32 %v3114_v38, %v568_v28  ;;  %v2515_v31 = vpop.f32.mrb[10].mxu0  ;;  %v2547_v32 = vpop.f32.mrb[10].mxu1 }
  0xf0   :  { %v2280_v33 = vpack.c.bf16 %v449_v25, %v449_v25  ;;  %v2312_v34 = vpack.c.bf16 %v577_v26, %v577_v26  ;;  %v452_v35 = vadd.f32 %v2515_v31, %v3114_v38  ;;  %v580_v36 = vadd.f32 %v2547_v32, %v3114_v38  ;;  %v443_v37 = vpop.f32.mrb[11].mxu0  ;;  %v571_v39 = vpop.f32.mrb[11].mxu1 }
  0xf1   :  { %v2278_v40 = vpack.c.bf16 %v441_v29, %v441_v29  ;;  %v2310_v41 = vpack.c.bf16 %v569_v30, %v569_v30  ;;  %v444_v42 = vadd.f32 %v3114_v38, %v443_v37  ;;  %v572_v43 = vadd.f32 %v3114_v38, %v571_v39 }
  0xf2   :  { %1554 = vst.msk [vmem:[%s4091_s7 + $0x28] sm:$0xf] %vm1543_vm1, %v2280_v33  ;;  %1586 = vst.msk [vmem:[%s4091_s7 + $0xa8] sm:$0xf] %vm1543_vm1, %v2312_v34  ;;  %v2281_v44 = vpack.c.bf16 %v452_v35, %v452_v35  ;;  %v2313_v45 = vpack.c.bf16 %v580_v36, %v580_v36 }
  0xf3   :  { %1552 = vst.msk [vmem:[%s4091_s7 + $0x20] sm:$0xf] %vm1543_vm1, %v2278_v40  ;;  %1584 = vst.msk [vmem:[%s4091_s7 + $0xa0] sm:$0xf] %vm1543_vm1, %v2310_v41  ;;  %v2279_v46 = vpack.c.bf16 %v444_v42, %v444_v42  ;;  %v2311_v47 = vpack.c.bf16 %v572_v43, %v572_v43 }
  0xf4   :  { %1555 = vst.msk [vmem:[%s4091_s7 + $0x2c] sm:$0xf] %vm1543_vm1, %v2281_v44  ;;  %1587 = vst.msk [vmem:[%s4091_s7 + $0xac] sm:$0xf] %vm1543_vm1, %v2313_v45 }
  0xf5   :  { %1553 = vst.msk [vmem:[%s4091_s7 + $0x24] sm:$0xf] %vm1543_vm1, %v2279_v46  ;;  %1585 = vst.msk [vmem:[%s4091_s7 + $0xa4] sm:$0xf] %vm1543_vm1, %v2311_v47  ;;  %v2518_v48 = vpop.f32.mrb[12].mxu0  ;;  %v2550_v49 = vpop.f32.mrb[12].mxu1 }
  0xf6   :  { %v465_v50 = vadd.f32 %v2518_v48, %v3114_v38  ;;  %v593_v51 = vadd.f32 %v2550_v49, %v3114_v38  ;;  %v456_v52 = vpop.f32.mrb[13].mxu0  ;;  %v584_v53 = vpop.f32.mrb[13].mxu1 }
  0xf7   :  { %v457_v54 = vadd.f32 %v3114_v38, %v456_v52  ;;  %v585_v55 = vadd.f32 %v3114_v38, %v584_v53  ;;  %v2519_v56 = vpop.f32.mrb[14].mxu0  ;;  %v2551_v57 = vpop.f32.mrb[14].mxu1 }
  0xf8   :  { %v2284_v58 = vpack.c.bf16 %v465_v50, %v465_v50  ;;  %v2316_v59 = vpack.c.bf16 %v593_v51, %v593_v51  ;;  %v468_v60 = vadd.f32 %v2519_v56, %v3114_v38  ;;  %v596_v61 = vadd.f32 %v2551_v57, %v3114_v38  ;;  %v459_v62 = vpop.f32.mrb[15].mxu0  ;;  %v587_v63 = vpop.f32.mrb[15].mxu1 }
  0xf9   :  { %v2282_v0 = vpack.c.bf16 %v457_v54, %v457_v54  ;;  %v2314_v1 = vpack.c.bf16 %v585_v55, %v585_v55  ;;  %v460_v2 = vadd.f32 %v3114_v38, %v459_v62  ;;  %v588_v3 = vadd.f32 %v3114_v38, %v587_v63 }
  0xfa   :  { %1558 = vst.msk [vmem:[%s4091_s7 + $0x38] sm:$0xf] %vm1543_vm1, %v2284_v58  ;;  %1590 = vst.msk [vmem:[%s4091_s7 + $0xb8] sm:$0xf] %vm1543_vm1, %v2316_v59  ;;  %v2285_v4 = vpack.c.bf16 %v468_v60, %v468_v60  ;;  %v2317_v5 = vpack.c.bf16 %v596_v61, %v596_v61 }
  0xfb   :  { %1556 = vst.msk [vmem:[%s4091_s7 + $0x30] sm:$0xf] %vm1543_vm1, %v2282_v0  ;;  %1588 = vst.msk [vmem:[%s4091_s7 + $0xb0] sm:$0xf] %vm1543_vm1, %v2314_v1  ;;  %v2283_v6 = vpack.c.bf16 %v460_v2, %v460_v2  ;;  %v2315_v7 = vpack.c.bf16 %v588_v3, %v588_v3 }
  0xfc   :  { %1559 = vst.msk [vmem:[%s4091_s7 + $0x3c] sm:$0xf] %vm1543_vm1, %v2285_v4  ;;  %1591 = vst.msk [vmem:[%s4091_s7 + $0xbc] sm:$0xf] %vm1543_vm1, %v2317_v5 }
  0xfd   :  { %1557 = vst.msk [vmem:[%s4091_s7 + $0x34] sm:$0xf] %vm1543_vm1, %v2283_v6  ;;  %1589 = vst.msk [vmem:[%s4091_s7 + $0xb4] sm:$0xf] %vm1543_vm1, %v2315_v7  ;;  %v2522_v8 = vpop.f32.mrb[16].mxu0  ;;  %v2554_v9 = vpop.f32.mrb[16].mxu1 }
  0xfe   :  { %v481_v10 = vadd.f32 %v2522_v8, %v3114_v38  ;;  %v609_v11 = vadd.f32 %v2554_v9, %v3114_v38  ;;  %v472_v12 = vpop.f32.mrb[17].mxu0  ;;  %v600_v13 = vpop.f32.mrb[17].mxu1 }
  0xff   :  { %v473_v14 = vadd.f32 %v3114_v38, %v472_v12  ;;  %v601_v15 = vadd.f32 %v3114_v38, %v600_v13  ;;  %v2523_v16 = vpop.f32.mrb[18].mxu0  ;;  %v2555_v17 = vpop.f32.mrb[18].mxu1 }
 0x100   :  { %v2288_v18 = vpack.c.bf16 %v481_v10, %v481_v10  ;;  %v2320_v19 = vpack.c.bf16 %v609_v11, %v609_v11  ;;  %v484_v20 = vadd.f32 %v2523_v16, %v3114_v38  ;;  %v612_v21 = vadd.f32 %v2555_v17, %v3114_v38  ;;  %v475_v22 = vpop.f32.mrb[19].mxu0  ;;  %v603_v23 = vpop.f32.mrb[19].mxu1 }
 0x101   :  { %v2286_v24 = vpack.c.bf16 %v473_v14, %v473_v14  ;;  %v2318_v25 = vpack.c.bf16 %v601_v15, %v601_v15  ;;  %v476_v26 = vadd.f32 %v3114_v38, %v475_v22  ;;  %v604_v27 = vadd.f32 %v3114_v38, %v603_v23 }
 0x102   :  { %1562 = vst.msk [vmem:[%s4091_s7 + $0x48] sm:$0xf] %vm1543_vm1, %v2288_v18  ;;  %1594 = vst.msk [vmem:[%s4091_s7 + $0xc8] sm:$0xf] %vm1543_vm1, %v2320_v19  ;;  %v2289_v28 = vpack.c.bf16 %v484_v20, %v484_v20  ;;  %v2321_v29 = vpack.c.bf16 %v612_v21, %v612_v21 }
 0x103   :  { %1560 = vst.msk [vmem:[%s4091_s7 + $0x40] sm:$0xf] %vm1543_vm1, %v2286_v24  ;;  %1592 = vst.msk [vmem:[%s4091_s7 + $0xc0] sm:$0xf] %vm1543_vm1, %v2318_v25  ;;  %v2287_v30 = vpack.c.bf16 %v476_v26, %v476_v26  ;;  %v2319_v31 = vpack.c.bf16 %v604_v27, %v604_v27 }
 0x104   :  { %1563 = vst.msk [vmem:[%s4091_s7 + $0x4c] sm:$0xf] %vm1543_vm1, %v2289_v28  ;;  %1595 = vst.msk [vmem:[%s4091_s7 + $0xcc] sm:$0xf] %vm1543_vm1, %v2321_v29 }
 0x105   :  { %1561 = vst.msk [vmem:[%s4091_s7 + $0x44] sm:$0xf] %vm1543_vm1, %v2287_v30  ;;  %1593 = vst.msk [vmem:[%s4091_s7 + $0xc4] sm:$0xf] %vm1543_vm1, %v2319_v31  ;;  %v2526_v32 = vpop.f32.mrb[20].mxu0  ;;  %v2558_v33 = vpop.f32.mrb[20].mxu1 }
 0x106   :  { %v497_v34 = vadd.f32 %v2526_v32, %v3114_v38  ;;  %v625_v35 = vadd.f32 %v2558_v33, %v3114_v38  ;;  %v488_v36 = vpop.f32.mrb[21].mxu0  ;;  %v616_v37 = vpop.f32.mrb[21].mxu1 }
 0x107   :  { %v489_v39 = vadd.f32 %v3114_v38, %v488_v36  ;;  %v617_v40 = vadd.f32 %v3114_v38, %v616_v37  ;;  %v2527_v41 = vpop.f32.mrb[22].mxu0  ;;  %v2559_v42 = vpop.f32.mrb[22].mxu1 }
 0x108   :  { %v2292_v43 = vpack.c.bf16 %v497_v34, %v497_v34  ;;  %v2324_v44 = vpack.c.bf16 %v625_v35, %v625_v35  ;;  %v500_v45 = vadd.f32 %v2527_v41, %v3114_v38  ;;  %v628_v46 = vadd.f32 %v2559_v42, %v3114_v38  ;;  %v491_v47 = vpop.f32.mrb[23].mxu0  ;;  %v619_v48 = vpop.f32.mrb[23].mxu1  ;;  %v3423_v41 = vld [vmem:[%s4092_s5] ss:$0 sm:$0xff] }
 0x109   :  { %v2290_v49 = vpack.c.bf16 %v489_v39, %v489_v39  ;;  %v2322_v50 = vpack.c.bf16 %v617_v40, %v617_v40  ;;  %v492_v51 = vadd.f32 %v3114_v38, %v491_v47  ;;  %v620_v52 = vadd.f32 %v3114_v38, %v619_v48  ;;  %v3428_v42 = vld [vmem:[%s4093_s6] ss:$0 sm:$0xff] }
 0x10a   :  { %1566 = vst.msk [vmem:[%s4091_s7 + $0x58] sm:$0xf] %vm1543_vm1, %v2292_v43  ;;  %1598 = vst.msk [vmem:[%s4091_s7 + $0xd8] sm:$0xf] %vm1543_vm1, %v2324_v44  ;;  %v2293_v53 = vpack.c.bf16 %v500_v45, %v500_v45  ;;  %v2325_v54 = vpack.c.bf16 %v628_v46, %v628_v46 }
 0x10b   :  { %1564 = vst.msk [vmem:[%s4091_s7 + $0x50] sm:$0xf] %vm1543_vm1, %v2290_v49  ;;  %1596 = vst.msk [vmem:[%s4091_s7 + $0xd0] sm:$0xf] %vm1543_vm1, %v2322_v50  ;;  %v2291_v55 = vpack.c.bf16 %v492_v51, %v492_v51  ;;  %v2323_v56 = vpack.c.bf16 %v620_v52, %v620_v52 }
 0x10c   :  { %1567 = vst.msk [vmem:[%s4091_s7 + $0x5c] sm:$0xf] %vm1543_vm1, %v2293_v53  ;;  %1599 = vst.msk [vmem:[%s4091_s7 + $0xdc] sm:$0xf] %vm1543_vm1, %v2325_v54 }
 0x10d   :  { %1565 = vst.msk [vmem:[%s4091_s7 + $0x54] sm:$0xf] %vm1543_vm1, %v2291_v55  ;;  %1597 = vst.msk [vmem:[%s4091_s7 + $0xd4] sm:$0xf] %vm1543_vm1, %v2323_v56  ;;  %v2530_v57 = vpop.f32.mrb[24].mxu0  ;;  %v2562_v58 = vpop.f32.mrb[24].mxu1 }
 0x10e   :  { %v513_v59 = vadd.f32 %v2530_v57, %v3114_v38  ;;  %v641_v60 = vadd.f32 %v2562_v58, %v3114_v38  ;;  %v504_v61 = vpop.f32.mrb[25].mxu0  ;;  %v632_v62 = vpop.f32.mrb[25].mxu1 }
 0x10f   :  { %v505_v63 = vadd.f32 %v3114_v38, %v504_v61  ;;  %v633_v0 = vadd.f32 %v3114_v38, %v632_v62  ;;  %v2531_v1 = vpop.f32.mrb[26].mxu0  ;;  %v2563_v2 = vpop.f32.mrb[26].mxu1 }
 0x110   :  { %v2296_v3 = vpack.c.bf16 %v513_v59, %v513_v59  ;;  %v2328_v4 = vpack.c.bf16 %v641_v60, %v641_v60  ;;  %v516_v5 = vadd.f32 %v2531_v1, %v3114_v38  ;;  %v644_v6 = vadd.f32 %v2563_v2, %v3114_v38  ;;  %v507_v7 = vpop.f32.mrb[27].mxu0  ;;  %v635_v8 = vpop.f32.mrb[27].mxu1 }
 0x111   :  { %v2294_v9 = vpack.c.bf16 %v505_v63, %v505_v63  ;;  %v2326_v10 = vpack.c.bf16 %v633_v0, %v633_v0  ;;  %v508_v11 = vadd.f32 %v3114_v38, %v507_v7  ;;  %v636_v12 = vadd.f32 %v3114_v38, %v635_v8 }
 0x112   :  { %1570 = vst.msk [vmem:[%s4091_s7 + $0x68] sm:$0xf] %vm1543_vm1, %v2296_v3  ;;  %1602 = vst.msk [vmem:[%s4091_s7 + $0xe8] sm:$0xf] %vm1543_vm1, %v2328_v4  ;;  %v2297_v13 = vpack.c.bf16 %v516_v5, %v516_v5  ;;  %v2329_v14 = vpack.c.bf16 %v644_v6, %v644_v6 }
 0x113   :  { %1568 = vst.msk [vmem:[%s4091_s7 + $0x60] sm:$0xf] %vm1543_vm1, %v2294_v9  ;;  %1600 = vst.msk [vmem:[%s4091_s7 + $0xe0] sm:$0xf] %vm1543_vm1, %v2326_v10  ;;  %v2295_v15 = vpack.c.bf16 %v508_v11, %v508_v11  ;;  %v2327_v16 = vpack.c.bf16 %v636_v12, %v636_v12 }
 0x114   :  { %1571 = vst.msk [vmem:[%s4091_s7 + $0x6c] sm:$0xf] %vm1543_vm1, %v2297_v13  ;;  %1603 = vst.msk [vmem:[%s4091_s7 + $0xec] sm:$0xf] %vm1543_vm1, %v2329_v14 }
 0x115   :  { %1569 = vst.msk [vmem:[%s4091_s7 + $0x64] sm:$0xf] %vm1543_vm1, %v2295_v15  ;;  %1601 = vst.msk [vmem:[%s4091_s7 + $0xe4] sm:$0xf] %vm1543_vm1, %v2327_v16  ;;  %v2534_v17 = vpop.f32.mrb[28].mxu0  ;;  %v2566_v18 = vpop.f32.mrb[28].mxu1 }
 0x116   :  { %v529_v19 = vadd.f32 %v2534_v17, %v3114_v38  ;;  %v657_v20 = vadd.f32 %v2566_v18, %v3114_v38  ;;  %v520_v21 = vpop.f32.mrb[29].mxu0  ;;  %v648_v22 = vpop.f32.mrb[29].mxu1 }
 0x117   :  { %v521_v23 = vadd.f32 %v3114_v38, %v520_v21  ;;  %v649_v24 = vadd.f32 %v3114_v38, %v648_v22  ;;  %v2535_v25 = vpop.f32.mrb[30].mxu0  ;;  %v2567_v26 = vpop.f32.mrb[30].mxu1 }
 0x118   :  { %v2300_v27 = vpack.c.bf16 %v529_v19, %v529_v19  ;;  %v2332_v28 = vpack.c.bf16 %v657_v20, %v657_v20  ;;  %v532_v29 = vadd.f32 %v2535_v25, %v3114_v38  ;;  %v660_v30 = vadd.f32 %v2567_v26, %v3114_v38  ;;  %v523_v31 = vpop.f32.mrb[31].mxu0  ;;  %v651_v32 = vpop.f32.mrb[31].mxu1 }
 0x119   :  { %v2298_v33 = vpack.c.bf16 %v521_v23, %v521_v23  ;;  %v2330_v34 = vpack.c.bf16 %v649_v24, %v649_v24  ;;  %v524_v35 = vadd.f32 %v3114_v38, %v523_v31  ;;  %v652_v36 = vadd.f32 %v3114_v38, %v651_v32 }
 0x11a   :  { %1574 = vst.msk [vmem:[%s4091_s7 + $0x78] sm:$0xf] %vm1543_vm1, %v2300_v27  ;;  %1606 = vst.msk [vmem:[%s4091_s7 + $0xf8] sm:$0xf] %vm1543_vm1, %v2332_v28  ;;  %v2301_v37 = vpack.c.bf16 %v532_v29, %v532_v29  ;;  %v2333_v39 = vpack.c.bf16 %v660_v30, %v660_v30 }
 0x11b   :  { %1572 = vst.msk [vmem:[%s4091_s7 + $0x70] sm:$0xf] %vm1543_vm1, %v2298_v33  ;;  %1604 = vst.msk [vmem:[%s4091_s7 + $0xf0] sm:$0xf] %vm1543_vm1, %v2330_v34  ;;  %v2299_v38 = vpack.c.bf16 %v524_v35, %v524_v35  ;;  %v2331_v40 = vpack.c.bf16 %v652_v36, %v652_v36 }
 0x11c   :  { %1575 = vst.msk [vmem:[%s4091_s7 + $0x7c] sm:$0xf] %vm1543_vm1, %v2301_v37  ;;  %1607 = vst.msk [vmem:[%s4091_s7 + $0xfc] sm:$0xf] %vm1543_vm1, %v2333_v39 }
 0x11d   :  { %1573 = vst.msk [vmem:[%s4091_s7 + $0x74] sm:$0xf] %vm1543_vm1, %v2299_v38  ;;  %1605 = vst.msk [vmem:[%s4091_s7 + $0xf4] sm:$0xf] %vm1543_vm1, %v2331_v40  ;;  %v2574_v43 = vpop.f32.mrb[32].mxu1  ;;  %v2642_v44 = vpop.f32.mrb[32].mxu0 }
 0x11e   :  { %v729_v45 = vadd.f32 %v2574_v43, %v3423_v41  ;;  %v1041_v46 = vadd.f32 %v2642_v44, %v3428_v42  ;;  %v720_v47 = vpop.f32.mrb[33].mxu1  ;;  %v1032_v48 = vpop.f32.mrb[33].mxu0 }
 0x11f   :  { %v721_v49 = vadd.f32 %v3423_v41, %v720_v47  ;;  %v1033_v50 = vadd.f32 %v3428_v42, %v1032_v48  ;;  %v2575_v51 = vpop.f32.mrb[34].mxu1  ;;  %v2643_v52 = vpop.f32.mrb[34].mxu0 }
 0x120   :  { %v2336_v53 = vpack.c.bf16 %v729_v45, %v729_v45  ;;  %1931 = vst.msk [vmem:[%s4094_s9 + $0x10] sm:$0xff] %vm1928_vm2, %v1041_v46  ;;  %v732_v54 = vadd.f32 %v2575_v51, %v3423_v41  ;;  %v1044_v55 = vadd.f32 %v2643_v52, %v3428_v42  ;;  %v723_v56 = vpop.f32.mrb[35].mxu1  ;;  %v1035_v57 = vpop.f32.mrb[35].mxu0 }
 0x121   :  { %v2334_v58 = vpack.c.bf16 %v721_v49, %v721_v49  ;;  %1929 = vst.msk [vmem:[%s4094_s9] sm:$0xff] %vm1928_vm2, %v1033_v50  ;;  %v724_v59 = vadd.f32 %v3423_v41, %v723_v56  ;;  %v1036_v60 = vadd.f32 %v3428_v42, %v1035_v57 }
 0x122   :  { %1866 = vst.msk [vmem:[%s4095_s8 + $0x8] sm:$0xf] %vm1543_vm1, %v2336_v53  ;;  %v2337_v61 = vpack.c.bf16 %v732_v54, %v732_v54 }
 0x123   :  { %1932 = vst.msk [vmem:[%s4094_s9 + $0x18] sm:$0xff] %vm1928_vm2, %v1044_v55  ;;  %v2335_v62 = vpack.c.bf16 %v724_v59, %v724_v59  ;;  %1930 = vst.msk [vmem:[%s4094_s9 + $0x8] sm:$0xff] %vm1928_vm2, %v1036_v60 }
 0x124   :  { %1864 = vst.msk [vmem:[%s4095_s8] sm:$0xf] %vm1543_vm1, %v2334_v58  ;;  %1867 = vst.msk [vmem:[%s4095_s8 + $0xc] sm:$0xf] %vm1543_vm1, %v2337_v61 }
 0x125   :  { %1865 = vst.msk [vmem:[%s4095_s8 + $0x4] sm:$0xf] %vm1543_vm1, %v2335_v62  ;;  %v2578_v63 = vpop.f32.mrb[36].mxu1  ;;  %v2646_v0 = vpop.f32.mrb[36].mxu0 }
 0x126   :  { %v745_v1 = vadd.f32 %v2578_v63, %v3423_v41  ;;  %v1057_v2 = vadd.f32 %v2646_v0, %v3428_v42  ;;  %v736_v3 = vpop.f32.mrb[37].mxu1  ;;  %v1048_v4 = vpop.f32.mrb[37].mxu0 }
 0x127   :  { %v737_v5 = vadd.f32 %v3423_v41, %v736_v3  ;;  %v1049_v6 = vadd.f32 %v3428_v42, %v1048_v4  ;;  %v2579_v7 = vpop.f32.mrb[38].mxu1  ;;  %v2647_v8 = vpop.f32.mrb[38].mxu0 }
 0x128   :  { %v2340_v9 = vpack.c.bf16 %v745_v1, %v745_v1  ;;  %1935 = vst.msk [vmem:[%s4094_s9 + $0x30] sm:$0xff] %vm1928_vm2, %v1057_v2  ;;  %v748_v10 = vadd.f32 %v2579_v7, %v3423_v41  ;;  %v1060_v11 = vadd.f32 %v2647_v8, %v3428_v42  ;;  %v739_v12 = vpop.f32.mrb[39].mxu1  ;;  %v1051_v13 = vpop.f32.mrb[39].mxu0 }
 0x129   :  { %v2338_v14 = vpack.c.bf16 %v737_v5, %v737_v5  ;;  %1933 = vst.msk [vmem:[%s4094_s9 + $0x20] sm:$0xff] %vm1928_vm2, %v1049_v6  ;;  %v740_v15 = vadd.f32 %v3423_v41, %v739_v12  ;;  %v1052_v16 = vadd.f32 %v3428_v42, %v1051_v13 }
 0x12a   :  { %1870 = vst.msk [vmem:[%s4095_s8 + $0x18] sm:$0xf] %vm1543_vm1, %v2340_v9  ;;  %v2341_v17 = vpack.c.bf16 %v748_v10, %v748_v10 }
 0x12b   :  { %1936 = vst.msk [vmem:[%s4094_s9 + $0x38] sm:$0xff] %vm1928_vm2, %v1060_v11  ;;  %v2339_v18 = vpack.c.bf16 %v740_v15, %v740_v15  ;;  %1934 = vst.msk [vmem:[%s4094_s9 + $0x28] sm:$0xff] %vm1928_vm2, %v1052_v16 }
 0x12c   :  { %1868 = vst.msk [vmem:[%s4095_s8 + $0x10] sm:$0xf] %vm1543_vm1, %v2338_v14  ;;  %1871 = vst.msk [vmem:[%s4095_s8 + $0x1c] sm:$0xf] %vm1543_vm1, %v2341_v17 }
 0x12d   :  { %1869 = vst.msk [vmem:[%s4095_s8 + $0x14] sm:$0xf] %vm1543_vm1, %v2339_v18  ;;  %v2582_v19 = vpop.f32.mrb[40].mxu1  ;;  %v2650_v20 = vpop.f32.mrb[40].mxu0 }
 0x12e   :  { %v761_v21 = vadd.f32 %v2582_v19, %v3423_v41  ;;  %v1073_v22 = vadd.f32 %v2650_v20, %v3428_v42  ;;  %v752_v23 = vpop.f32.mrb[41].mxu1  ;;  %v1064_v24 = vpop.f32.mrb[41].mxu0 }
 0x12f   :  { %v753_v25 = vadd.f32 %v3423_v41, %v752_v23  ;;  %v1065_v26 = vadd.f32 %v3428_v42, %v1064_v24  ;;  %v2583_v27 = vpop.f32.mrb[42].mxu1  ;;  %v2651_v28 = vpop.f32.mrb[42].mxu0 }
 0x130   :  { %v2344_v29 = vpack.c.bf16 %v761_v21, %v761_v21  ;;  %1939 = vst.msk [vmem:[%s4094_s9 + $0x50] sm:$0xff] %vm1928_vm2, %v1073_v22  ;;  %v764_v30 = vadd.f32 %v2583_v27, %v3423_v41  ;;  %v1076_v31 = vadd.f32 %v2651_v28, %v3428_v42  ;;  %v755_v32 = vpop.f32.mrb[43].mxu1  ;;  %v1067_v33 = vpop.f32.mrb[43].mxu0 }
 0x131   :  { %v2342_v34 = vpack.c.bf16 %v753_v25, %v753_v25  ;;  %1937 = vst.msk [vmem:[%s4094_s9 + $0x40] sm:$0xff] %vm1928_vm2, %v1065_v26  ;;  %v756_v35 = vadd.f32 %v3423_v41, %v755_v32  ;;  %v1068_v36 = vadd.f32 %v3428_v42, %v1067_v33 }
 0x132   :  { %1874 = vst.msk [vmem:[%s4095_s8 + $0x28] sm:$0xf] %vm1543_vm1, %v2344_v29  ;;  %v2345_v37 = vpack.c.bf16 %v764_v30, %v764_v30 }
 0x133   :  { %1940 = vst.msk [vmem:[%s4094_s9 + $0x58] sm:$0xff] %vm1928_vm2, %v1076_v31  ;;  %v2343_v39 = vpack.c.bf16 %v756_v35, %v756_v35  ;;  %1938 = vst.msk [vmem:[%s4094_s9 + $0x48] sm:$0xff] %vm1928_vm2, %v1068_v36 }
 0x134   :  { %1872 = vst.msk [vmem:[%s4095_s8 + $0x20] sm:$0xf] %vm1543_vm1, %v2342_v34  ;;  %1875 = vst.msk [vmem:[%s4095_s8 + $0x2c] sm:$0xf] %vm1543_vm1, %v2345_v37 }
 0x135   :  { %1873 = vst.msk [vmem:[%s4095_s8 + $0x24] sm:$0xf] %vm1543_vm1, %v2343_v39  ;;  %v2586_v38 = vpop.f32.mrb[44].mxu1  ;;  %v2654_v40 = vpop.f32.mrb[44].mxu0 }
 0x136   :  { %v777_v43 = vadd.f32 %v2586_v38, %v3423_v41  ;;  %v1089_v44 = vadd.f32 %v2654_v40, %v3428_v42  ;;  %v768_v45 = vpop.f32.mrb[45].mxu1  ;;  %v1080_v46 = vpop.f32.mrb[45].mxu0 }
 0x137   :  { %v769_v47 = vadd.f32 %v3423_v41, %v768_v45  ;;  %v1081_v48 = vadd.f32 %v3428_v42, %v1080_v46  ;;  %v2587_v49 = vpop.f32.mrb[46].mxu1  ;;  %v2655_v50 = vpop.f32.mrb[46].mxu0 }
 0x138   :  { %v2348_v51 = vpack.c.bf16 %v777_v43, %v777_v43  ;;  %1943 = vst.msk [vmem:[%s4094_s9 + $0x70] sm:$0xff] %vm1928_vm2, %v1089_v44  ;;  %v780_v52 = vadd.f32 %v2587_v49, %v3423_v41  ;;  %v1092_v53 = vadd.f32 %v2655_v50, %v3428_v42  ;;  %v771_v54 = vpop.f32.mrb[47].mxu1  ;;  %v1083_v55 = vpop.f32.mrb[47].mxu0 }
 0x139   :  { %v2346_v56 = vpack.c.bf16 %v769_v47, %v769_v47  ;;  %1941 = vst.msk [vmem:[%s4094_s9 + $0x60] sm:$0xff] %vm1928_vm2, %v1081_v48  ;;  %v772_v57 = vadd.f32 %v3423_v41, %v771_v54  ;;  %v1084_v58 = vadd.f32 %v3428_v42, %v1083_v55 }
 0x13a   :  { %1878 = vst.msk [vmem:[%s4095_s8 + $0x38] sm:$0xf] %vm1543_vm1, %v2348_v51  ;;  %v2349_v59 = vpack.c.bf16 %v780_v52, %v780_v52 }
 0x13b   :  { %1944 = vst.msk [vmem:[%s4094_s9 + $0x78] sm:$0xff] %vm1928_vm2, %v1092_v53  ;;  %v2347_v60 = vpack.c.bf16 %v772_v57, %v772_v57  ;;  %1942 = vst.msk [vmem:[%s4094_s9 + $0x68] sm:$0xff] %vm1928_vm2, %v1084_v58 }
 0x13c   :  { %1876 = vst.msk [vmem:[%s4095_s8 + $0x30] sm:$0xf] %vm1543_vm1, %v2346_v56  ;;  %1879 = vst.msk [vmem:[%s4095_s8 + $0x3c] sm:$0xf] %vm1543_vm1, %v2349_v59 }
 0x13d   :  { %1877 = vst.msk [vmem:[%s4095_s8 + $0x34] sm:$0xf] %vm1543_vm1, %v2347_v60  ;;  %v2590_v61 = vpop.f32.mrb[48].mxu1  ;;  %v2658_v62 = vpop.f32.mrb[48].mxu0 }
 0x13e   :  { %v793_v63 = vadd.f32 %v2590_v61, %v3423_v41  ;;  %v1105_v0 = vadd.f32 %v2658_v62, %v3428_v42  ;;  %v784_v1 = vpop.f32.mrb[49].mxu1  ;;  %v1096_v2 = vpop.f32.mrb[49].mxu0 }
 0x13f   :  { %v785_v3 = vadd.f32 %v3423_v41, %v784_v1  ;;  %v1097_v4 = vadd.f32 %v3428_v42, %v1096_v2  ;;  %v2591_v5 = vpop.f32.mrb[50].mxu1  ;;  %v2659_v6 = vpop.f32.mrb[50].mxu0 }
 0x140   :  { %v2352_v7 = vpack.c.bf16 %v793_v63, %v793_v63  ;;  %1947 = vst.msk [vmem:[%s4094_s9 + $0x90] sm:$0xff] %vm1928_vm2, %v1105_v0  ;;  %v796_v8 = vadd.f32 %v2591_v5, %v3423_v41  ;;  %v1108_v9 = vadd.f32 %v2659_v6, %v3428_v42  ;;  %v787_v10 = vpop.f32.mrb[51].mxu1  ;;  %v1099_v11 = vpop.f32.mrb[51].mxu0 }
 0x141   :  { %v2350_v12 = vpack.c.bf16 %v785_v3, %v785_v3  ;;  %1945 = vst.msk [vmem:[%s4094_s9 + $0x80] sm:$0xff] %vm1928_vm2, %v1097_v4  ;;  %v788_v13 = vadd.f32 %v3423_v41, %v787_v10  ;;  %v1100_v14 = vadd.f32 %v3428_v42, %v1099_v11 }
 0x142   :  { %1882 = vst.msk [vmem:[%s4095_s8 + $0x48] sm:$0xf] %vm1543_vm1, %v2352_v7  ;;  %v2353_v15 = vpack.c.bf16 %v796_v8, %v796_v8 }
 0x143   :  { %1948 = vst.msk [vmem:[%s4094_s9 + $0x98] sm:$0xff] %vm1928_vm2, %v1108_v9  ;;  %v2351_v16 = vpack.c.bf16 %v788_v13, %v788_v13  ;;  %1946 = vst.msk [vmem:[%s4094_s9 + $0x88] sm:$0xff] %vm1928_vm2, %v1100_v14 }
 0x144   :  { %1880 = vst.msk [vmem:[%s4095_s8 + $0x40] sm:$0xf] %vm1543_vm1, %v2350_v12  ;;  %1883 = vst.msk [vmem:[%s4095_s8 + $0x4c] sm:$0xf] %vm1543_vm1, %v2353_v15 }
 0x145   :  { %1881 = vst.msk [vmem:[%s4095_s8 + $0x44] sm:$0xf] %vm1543_vm1, %v2351_v16  ;;  %v2594_v17 = vpop.f32.mrb[52].mxu1  ;;  %v2662_v18 = vpop.f32.mrb[52].mxu0 }
 0x146   :  { %v809_v19 = vadd.f32 %v2594_v17, %v3423_v41  ;;  %v1121_v20 = vadd.f32 %v2662_v18, %v3428_v42  ;;  %v800_v21 = vpop.f32.mrb[53].mxu1  ;;  %v1112_v22 = vpop.f32.mrb[53].mxu0 }
 0x147   :  { %v801_v23 = vadd.f32 %v3423_v41, %v800_v21  ;;  %v1113_v24 = vadd.f32 %v3428_v42, %v1112_v22  ;;  %v2595_v25 = vpop.f32.mrb[54].mxu1  ;;  %v2663_v26 = vpop.f32.mrb[54].mxu0 }
 0x148   :  { %v2356_v27 = vpack.c.bf16 %v809_v19, %v809_v19  ;;  %1951 = vst.msk [vmem:[%s4094_s9 + $0xb0] sm:$0xff] %vm1928_vm2, %v1121_v20  ;;  %v812_v28 = vadd.f32 %v2595_v25, %v3423_v41  ;;  %v1124_v29 = vadd.f32 %v2663_v26, %v3428_v42  ;;  %v803_v30 = vpop.f32.mrb[55].mxu1  ;;  %v1115_v31 = vpop.f32.mrb[55].mxu0 }
 0x149   :  { %v2354_v32 = vpack.c.bf16 %v801_v23, %v801_v23  ;;  %1949 = vst.msk [vmem:[%s4094_s9 + $0xa0] sm:$0xff] %vm1928_vm2, %v1113_v24  ;;  %v804_v33 = vadd.f32 %v3423_v41, %v803_v30  ;;  %v1116_v34 = vadd.f32 %v3428_v42, %v1115_v31 }
 0x14a   :  { %1886 = vst.msk [vmem:[%s4095_s8 + $0x58] sm:$0xf] %vm1543_vm1, %v2356_v27  ;;  %v2357_v35 = vpack.c.bf16 %v812_v28, %v812_v28 }
 0x14b   :  { %1952 = vst.msk [vmem:[%s4094_s9 + $0xb8] sm:$0xff] %vm1928_vm2, %v1124_v29  ;;  %v2355_v36 = vpack.c.bf16 %v804_v33, %v804_v33  ;;  %1950 = vst.msk [vmem:[%s4094_s9 + $0xa8] sm:$0xff] %vm1928_vm2, %v1116_v34 }
 0x14c   :  { %1884 = vst.msk [vmem:[%s4095_s8 + $0x50] sm:$0xf] %vm1543_vm1, %v2354_v32  ;;  %1887 = vst.msk [vmem:[%s4095_s8 + $0x5c] sm:$0xf] %vm1543_vm1, %v2357_v35 }
 0x14d   :  { %1885 = vst.msk [vmem:[%s4095_s8 + $0x54] sm:$0xf] %vm1543_vm1, %v2355_v36  ;;  %v2598_v37 = vpop.f32.mrb[56].mxu1  ;;  %v2666_v39 = vpop.f32.mrb[56].mxu0 }
 0x14e   :  { %v825_v38 = vadd.f32 %v2598_v37, %v3423_v41  ;;  %v1137_v40 = vadd.f32 %v2666_v39, %v3428_v42  ;;  %v816_v43 = vpop.f32.mrb[57].mxu1  ;;  %v1128_v44 = vpop.f32.mrb[57].mxu0 }
 0x14f   :  { %v817_v45 = vadd.f32 %v3423_v41, %v816_v43  ;;  %v1129_v46 = vadd.f32 %v3428_v42, %v1128_v44  ;;  %v2599_v47 = vpop.f32.mrb[58].mxu1  ;;  %v2667_v48 = vpop.f32.mrb[58].mxu0 }
 0x150   :  { %v2360_v49 = vpack.c.bf16 %v825_v38, %v825_v38  ;;  %1955 = vst.msk [vmem:[%s4094_s9 + $0xd0] sm:$0xff] %vm1928_vm2, %v1137_v40  ;;  %v828_v50 = vadd.f32 %v2599_v47, %v3423_v41  ;;  %v1140_v51 = vadd.f32 %v2667_v48, %v3428_v42  ;;  %v819_v52 = vpop.f32.mrb[59].mxu1  ;;  %v1131_v53 = vpop.f32.mrb[59].mxu0 }
 0x151   :  { %v2358_v54 = vpack.c.bf16 %v817_v45, %v817_v45  ;;  %1953 = vst.msk [vmem:[%s4094_s9 + $0xc0] sm:$0xff] %vm1928_vm2, %v1129_v46  ;;  %v820_v55 = vadd.f32 %v3423_v41, %v819_v52  ;;  %v1132_v56 = vadd.f32 %v3428_v42, %v1131_v53 }
 0x152   :  { %1890 = vst.msk [vmem:[%s4095_s8 + $0x68] sm:$0xf] %vm1543_vm1, %v2360_v49  ;;  %v2361_v57 = vpack.c.bf16 %v828_v50, %v828_v50 }
 0x153   :  { %1956 = vst.msk [vmem:[%s4094_s9 + $0xd8] sm:$0xff] %vm1928_vm2, %v1140_v51  ;;  %v2359_v58 = vpack.c.bf16 %v820_v55, %v820_v55  ;;  %1954 = vst.msk [vmem:[%s4094_s9 + $0xc8] sm:$0xff] %vm1928_vm2, %v1132_v56 }
 0x154   :  { %1888 = vst.msk [vmem:[%s4095_s8 + $0x60] sm:$0xf] %vm1543_vm1, %v2358_v54  ;;  %1891 = vst.msk [vmem:[%s4095_s8 + $0x6c] sm:$0xf] %vm1543_vm1, %v2361_v57 }
 0x155   :  { %1889 = vst.msk [vmem:[%s4095_s8 + $0x64] sm:$0xf] %vm1543_vm1, %v2359_v58  ;;  %v2602_v59 = vpop.f32.mrb[60].mxu1  ;;  %v2670_v60 = vpop.f32.mrb[60].mxu0 }
 0x156   :  { %v841_v61 = vadd.f32 %v2602_v59, %v3423_v41  ;;  %v1153_v62 = vadd.f32 %v2670_v60, %v3428_v42  ;;  %v832_v63 = vpop.f32.mrb[61].mxu1  ;;  %v1144_v0 = vpop.f32.mrb[61].mxu0 }
 0x157   :  { %v833_v1 = vadd.f32 %v3423_v41, %v832_v63  ;;  %v1145_v2 = vadd.f32 %v3428_v42, %v1144_v0  ;;  %v2603_v3 = vpop.f32.mrb[62].mxu1  ;;  %v2671_v4 = vpop.f32.mrb[62].mxu0 }
 0x158   :  { %v2364_v5 = vpack.c.bf16 %v841_v61, %v841_v61  ;;  %1959 = vst.msk [vmem:[%s4094_s9 + $0xf0] sm:$0xff] %vm1928_vm2, %v1153_v62  ;;  %v844_v6 = vadd.f32 %v2603_v3, %v3423_v41  ;;  %v1156_v7 = vadd.f32 %v2671_v4, %v3428_v42  ;;  %v835_v8 = vpop.f32.mrb[63].mxu1  ;;  %v1147_v9 = vpop.f32.mrb[63].mxu0 }
 0x159   :  { %v2362_v10 = vpack.c.bf16 %v833_v1, %v833_v1  ;;  %1957 = vst.msk [vmem:[%s4094_s9 + $0xe0] sm:$0xff] %vm1928_vm2, %v1145_v2  ;;  %v836_v11 = vadd.f32 %v3423_v41, %v835_v8  ;;  %v1148_v12 = vadd.f32 %v3428_v42, %v1147_v9 }
 0x15a   :  { %1894 = vst.msk [vmem:[%s4095_s8 + $0x78] sm:$0xf] %vm1543_vm1, %v2364_v5  ;;  %v2365_v13 = vpack.c.bf16 %v844_v6, %v844_v6 }
 0x15b   :  { %1960 = vst.msk [vmem:[%s4094_s9 + $0xf8] sm:$0xff] %vm1928_vm2, %v1156_v7  ;;  %v2363_v14 = vpack.c.bf16 %v836_v11, %v836_v11  ;;  %1958 = vst.msk [vmem:[%s4094_s9 + $0xe8] sm:$0xff] %vm1928_vm2, %v1148_v12 }
 0x15c   :  { %1892 = vst.msk [vmem:[%s4095_s8 + $0x70] sm:$0xf] %vm1543_vm1, %v2362_v10  ;;  %1895 = vst.msk [vmem:[%s4095_s8 + $0x7c] sm:$0xf] %vm1543_vm1, %v2365_v13 }
 0x15d   :  { %1893 = vst.msk [vmem:[%s4095_s8 + $0x74] sm:$0xf] %vm1543_vm1, %v2363_v14  ;;  %v2606_v15 = vpop.f32.mrb[64].mxu1  ;;  %v2674_v16 = vpop.f32.mrb[64].mxu0 }
 0x15e   :  { %v857_v17 = vadd.f32 %v2606_v15, %v3423_v41  ;;  %v1169_v18 = vadd.f32 %v2674_v16, %v3428_v42  ;;  %v848_v19 = vpop.f32.mrb[65].mxu1  ;;  %v1160_v20 = vpop.f32.mrb[65].mxu0 }
 0x15f   :  { %v849_v21 = vadd.f32 %v3423_v41, %v848_v19  ;;  %v1161_v22 = vadd.f32 %v3428_v42, %v1160_v20  ;;  %v2607_v23 = vpop.f32.mrb[66].mxu1  ;;  %v2675_v24 = vpop.f32.mrb[66].mxu0 }
 0x160   :  { %v2368_v25 = vpack.c.bf16 %v857_v17, %v857_v17  ;;  %1963 = vst.msk [vmem:[%s4094_s9 + $0x110] sm:$0xff] %vm1928_vm2, %v1169_v18  ;;  %v860_v26 = vadd.f32 %v2607_v23, %v3423_v41  ;;  %v1172_v27 = vadd.f32 %v2675_v24, %v3428_v42  ;;  %v851_v28 = vpop.f32.mrb[67].mxu1  ;;  %v1163_v29 = vpop.f32.mrb[67].mxu0 }
 0x161   :  { %v2366_v30 = vpack.c.bf16 %v849_v21, %v849_v21  ;;  %1961 = vst.msk [vmem:[%s4094_s9 + $0x100] sm:$0xff] %vm1928_vm2, %v1161_v22  ;;  %v852_v31 = vadd.f32 %v3423_v41, %v851_v28  ;;  %v1164_v32 = vadd.f32 %v3428_v42, %v1163_v29 }
 0x162   :  { %1898 = vst.msk [vmem:[%s4095_s8 + $0x88] sm:$0xf] %vm1543_vm1, %v2368_v25  ;;  %v2369_v33 = vpack.c.bf16 %v860_v26, %v860_v26 }
 0x163   :  { %1964 = vst.msk [vmem:[%s4094_s9 + $0x118] sm:$0xff] %vm1928_vm2, %v1172_v27  ;;  %v2367_v34 = vpack.c.bf16 %v852_v31, %v852_v31  ;;  %1962 = vst.msk [vmem:[%s4094_s9 + $0x108] sm:$0xff] %vm1928_vm2, %v1164_v32 }
 0x164   :  { %1896 = vst.msk [vmem:[%s4095_s8 + $0x80] sm:$0xf] %vm1543_vm1, %v2366_v30  ;;  %1899 = vst.msk [vmem:[%s4095_s8 + $0x8c] sm:$0xf] %vm1543_vm1, %v2369_v33 }
 0x165   :  { %1897 = vst.msk [vmem:[%s4095_s8 + $0x84] sm:$0xf] %vm1543_vm1, %v2367_v34  ;;  %v2610_v35 = vpop.f32.mrb[68].mxu1  ;;  %v2678_v36 = vpop.f32.mrb[68].mxu0 }
 0x166   :  { %v873_v37 = vadd.f32 %v2610_v35, %v3423_v41  ;;  %v1185_v39 = vadd.f32 %v2678_v36, %v3428_v42  ;;  %v864_v38 = vpop.f32.mrb[69].mxu1  ;;  %v1176_v40 = vpop.f32.mrb[69].mxu0 }
 0x167   :  { %v865_v43 = vadd.f32 %v3423_v41, %v864_v38  ;;  %v1177_v44 = vadd.f32 %v3428_v42, %v1176_v40  ;;  %v2611_v45 = vpop.f32.mrb[70].mxu1  ;;  %v2679_v46 = vpop.f32.mrb[70].mxu0 }
 0x168   :  { %v2372_v47 = vpack.c.bf16 %v873_v37, %v873_v37  ;;  %1967 = vst.msk [vmem:[%s4094_s9 + $0x130] sm:$0xff] %vm1928_vm2, %v1185_v39  ;;  %v876_v48 = vadd.f32 %v2611_v45, %v3423_v41  ;;  %v1188_v49 = vadd.f32 %v2679_v46, %v3428_v42  ;;  %v867_v50 = vpop.f32.mrb[71].mxu1  ;;  %v1179_v51 = vpop.f32.mrb[71].mxu0 }
 0x169   :  { %v2370_v52 = vpack.c.bf16 %v865_v43, %v865_v43  ;;  %1965 = vst.msk [vmem:[%s4094_s9 + $0x120] sm:$0xff] %vm1928_vm2, %v1177_v44  ;;  %v868_v53 = vadd.f32 %v3423_v41, %v867_v50  ;;  %v1180_v54 = vadd.f32 %v3428_v42, %v1179_v51 }
 0x16a   :  { %1902 = vst.msk [vmem:[%s4095_s8 + $0x98] sm:$0xf] %vm1543_vm1, %v2372_v47  ;;  %v2373_v55 = vpack.c.bf16 %v876_v48, %v876_v48 }
 0x16b   :  { %1968 = vst.msk [vmem:[%s4094_s9 + $0x138] sm:$0xff] %vm1928_vm2, %v1188_v49  ;;  %v2371_v56 = vpack.c.bf16 %v868_v53, %v868_v53  ;;  %1966 = vst.msk [vmem:[%s4094_s9 + $0x128] sm:$0xff] %vm1928_vm2, %v1180_v54 }
 0x16c   :  { %1900 = vst.msk [vmem:[%s4095_s8 + $0x90] sm:$0xf] %vm1543_vm1, %v2370_v52  ;;  %1903 = vst.msk [vmem:[%s4095_s8 + $0x9c] sm:$0xf] %vm1543_vm1, %v2373_v55 }
 0x16d   :  { %1901 = vst.msk [vmem:[%s4095_s8 + $0x94] sm:$0xf] %vm1543_vm1, %v2371_v56  ;;  %v2614_v57 = vpop.f32.mrb[72].mxu1  ;;  %v2682_v58 = vpop.f32.mrb[72].mxu0 }
 0x16e   :  { %v889_v59 = vadd.f32 %v2614_v57, %v3423_v41  ;;  %v1201_v60 = vadd.f32 %v2682_v58, %v3428_v42  ;;  %v880_v61 = vpop.f32.mrb[73].mxu1  ;;  %v1192_v62 = vpop.f32.mrb[73].mxu0 }
 0x16f   :  { %v881_v63 = vadd.f32 %v3423_v41, %v880_v61  ;;  %v1193_v0 = vadd.f32 %v3428_v42, %v1192_v62  ;;  %v2615_v1 = vpop.f32.mrb[74].mxu1  ;;  %v2683_v2 = vpop.f32.mrb[74].mxu0 }
 0x170   :  { %v2376_v3 = vpack.c.bf16 %v889_v59, %v889_v59  ;;  %1971 = vst.msk [vmem:[%s4094_s9 + $0x150] sm:$0xff] %vm1928_vm2, %v1201_v60  ;;  %v892_v4 = vadd.f32 %v2615_v1, %v3423_v41  ;;  %v1204_v5 = vadd.f32 %v2683_v2, %v3428_v42  ;;  %v883_v6 = vpop.f32.mrb[75].mxu1  ;;  %v1195_v7 = vpop.f32.mrb[75].mxu0 }
 0x171   :  { %v2374_v8 = vpack.c.bf16 %v881_v63, %v881_v63  ;;  %1969 = vst.msk [vmem:[%s4094_s9 + $0x140] sm:$0xff] %vm1928_vm2, %v1193_v0  ;;  %v884_v9 = vadd.f32 %v3423_v41, %v883_v6  ;;  %v1196_v10 = vadd.f32 %v3428_v42, %v1195_v7 }
 0x172   :  { %1906 = vst.msk [vmem:[%s4095_s8 + $0xa8] sm:$0xf] %vm1543_vm1, %v2376_v3  ;;  %v2377_v11 = vpack.c.bf16 %v892_v4, %v892_v4 }
 0x173   :  { %1972 = vst.msk [vmem:[%s4094_s9 + $0x158] sm:$0xff] %vm1928_vm2, %v1204_v5  ;;  %v2375_v12 = vpack.c.bf16 %v884_v9, %v884_v9  ;;  %1970 = vst.msk [vmem:[%s4094_s9 + $0x148] sm:$0xff] %vm1928_vm2, %v1196_v10 }
 0x174   :  { %1904 = vst.msk [vmem:[%s4095_s8 + $0xa0] sm:$0xf] %vm1543_vm1, %v2374_v8  ;;  %1907 = vst.msk [vmem:[%s4095_s8 + $0xac] sm:$0xf] %vm1543_vm1, %v2377_v11 }
 0x175   :  { %1905 = vst.msk [vmem:[%s4095_s8 + $0xa4] sm:$0xf] %vm1543_vm1, %v2375_v12  ;;  %v2618_v13 = vpop.f32.mrb[76].mxu1  ;;  %v2686_v14 = vpop.f32.mrb[76].mxu0 }
 0x176   :  { %v905_v15 = vadd.f32 %v2618_v13, %v3423_v41  ;;  %v1217_v16 = vadd.f32 %v2686_v14, %v3428_v42  ;;  %v896_v17 = vpop.f32.mrb[77].mxu1  ;;  %v1208_v18 = vpop.f32.mrb[77].mxu0 }
 0x177   :  { %v897_v19 = vadd.f32 %v3423_v41, %v896_v17  ;;  %v1209_v20 = vadd.f32 %v3428_v42, %v1208_v18  ;;  %v2619_v21 = vpop.f32.mrb[78].mxu1  ;;  %v2687_v22 = vpop.f32.mrb[78].mxu0 }
 0x178   :  { %v2380_v23 = vpack.c.bf16 %v905_v15, %v905_v15  ;;  %1975 = vst.msk [vmem:[%s4094_s9 + $0x170] sm:$0xff] %vm1928_vm2, %v1217_v16  ;;  %v908_v24 = vadd.f32 %v2619_v21, %v3423_v41  ;;  %v1220_v25 = vadd.f32 %v2687_v22, %v3428_v42  ;;  %v899_v26 = vpop.f32.mrb[79].mxu1  ;;  %v1211_v27 = vpop.f32.mrb[79].mxu0 }
 0x179   :  { %v2378_v28 = vpack.c.bf16 %v897_v19, %v897_v19  ;;  %1973 = vst.msk [vmem:[%s4094_s9 + $0x160] sm:$0xff] %vm1928_vm2, %v1209_v20  ;;  %v900_v29 = vadd.f32 %v3423_v41, %v899_v26  ;;  %v1212_v30 = vadd.f32 %v3428_v42, %v1211_v27 }
 0x17a   :  { %1910 = vst.msk [vmem:[%s4095_s8 + $0xb8] sm:$0xf] %vm1543_vm1, %v2380_v23  ;;  %v2381_v31 = vpack.c.bf16 %v908_v24, %v908_v24 }
 0x17b   :  { %1976 = vst.msk [vmem:[%s4094_s9 + $0x178] sm:$0xff] %vm1928_vm2, %v1220_v25  ;;  %v2379_v32 = vpack.c.bf16 %v900_v29, %v900_v29  ;;  %1974 = vst.msk [vmem:[%s4094_s9 + $0x168] sm:$0xff] %vm1928_vm2, %v1212_v30 }
 0x17c   :  { %1908 = vst.msk [vmem:[%s4095_s8 + $0xb0] sm:$0xf] %vm1543_vm1, %v2378_v28  ;;  %1911 = vst.msk [vmem:[%s4095_s8 + $0xbc] sm:$0xf] %vm1543_vm1, %v2381_v31 }
 0x17d   :  { %1909 = vst.msk [vmem:[%s4095_s8 + $0xb4] sm:$0xf] %vm1543_vm1, %v2379_v32  ;;  %v2622_v33 = vpop.f32.mrb[80].mxu1  ;;  %v2690_v34 = vpop.f32.mrb[80].mxu0 }
 0x17e   :  { %v921_v35 = vadd.f32 %v2622_v33, %v3423_v41  ;;  %v1233_v36 = vadd.f32 %v2690_v34, %v3428_v42  ;;  %v912_v37 = vpop.f32.mrb[81].mxu1  ;;  %v1224_v39 = vpop.f32.mrb[81].mxu0 }
 0x17f   :  { %v913_v38 = vadd.f32 %v3423_v41, %v912_v37  ;;  %v1225_v40 = vadd.f32 %v3428_v42, %v1224_v39  ;;  %v2623_v43 = vpop.f32.mrb[82].mxu1  ;;  %v2691_v44 = vpop.f32.mrb[82].mxu0 }
 0x180   :  { %v2384_v45 = vpack.c.bf16 %v921_v35, %v921_v35  ;;  %1979 = vst.msk [vmem:[%s4094_s9 + $0x190] sm:$0xff] %vm1928_vm2, %v1233_v36  ;;  %v924_v46 = vadd.f32 %v2623_v43, %v3423_v41  ;;  %v1236_v47 = vadd.f32 %v2691_v44, %v3428_v42  ;;  %v915_v48 = vpop.f32.mrb[83].mxu1  ;;  %v1227_v49 = vpop.f32.mrb[83].mxu0 }
 0x181   :  { %v2382_v50 = vpack.c.bf16 %v913_v38, %v913_v38  ;;  %1977 = vst.msk [vmem:[%s4094_s9 + $0x180] sm:$0xff] %vm1928_vm2, %v1225_v40  ;;  %v916_v51 = vadd.f32 %v3423_v41, %v915_v48  ;;  %v1228_v52 = vadd.f32 %v3428_v42, %v1227_v49 }
 0x182   :  { %1914 = vst.msk [vmem:[%s4095_s8 + $0xc8] sm:$0xf] %vm1543_vm1, %v2384_v45  ;;  %v2385_v53 = vpack.c.bf16 %v924_v46, %v924_v46 }
 0x183   :  { %1980 = vst.msk [vmem:[%s4094_s9 + $0x198] sm:$0xff] %vm1928_vm2, %v1236_v47  ;;  %v2383_v54 = vpack.c.bf16 %v916_v51, %v916_v51  ;;  %1978 = vst.msk [vmem:[%s4094_s9 + $0x188] sm:$0xff] %vm1928_vm2, %v1228_v52 }
 0x184   :  { %1912 = vst.msk [vmem:[%s4095_s8 + $0xc0] sm:$0xf] %vm1543_vm1, %v2382_v50  ;;  %1915 = vst.msk [vmem:[%s4095_s8 + $0xcc] sm:$0xf] %vm1543_vm1, %v2385_v53 }
 0x185   :  { %1913 = vst.msk [vmem:[%s4095_s8 + $0xc4] sm:$0xf] %vm1543_vm1, %v2383_v54  ;;  %v2626_v55 = vpop.f32.mrb[84].mxu1  ;;  %v2694_v56 = vpop.f32.mrb[84].mxu0 }
 0x186   :  { %v937_v57 = vadd.f32 %v2626_v55, %v3423_v41  ;;  %v1249_v58 = vadd.f32 %v2694_v56, %v3428_v42  ;;  %v928_v59 = vpop.f32.mrb[85].mxu1  ;;  %v1240_v60 = vpop.f32.mrb[85].mxu0 }
 0x187   :  { %v929_v61 = vadd.f32 %v3423_v41, %v928_v59  ;;  %v1241_v62 = vadd.f32 %v3428_v42, %v1240_v60  ;;  %v2627_v63 = vpop.f32.mrb[86].mxu1  ;;  %v2695_v0 = vpop.f32.mrb[86].mxu0 }
 0x188   :  { %v2388_v1 = vpack.c.bf16 %v937_v57, %v937_v57  ;;  %1983 = vst.msk [vmem:[%s4094_s9 + $0x1b0] sm:$0xff] %vm1928_vm2, %v1249_v58  ;;  %v940_v2 = vadd.f32 %v2627_v63, %v3423_v41  ;;  %v1252_v3 = vadd.f32 %v2695_v0, %v3428_v42  ;;  %v931_v4 = vpop.f32.mrb[87].mxu1  ;;  %v1243_v5 = vpop.f32.mrb[87].mxu0 }
 0x189   :  { %v2386_v6 = vpack.c.bf16 %v929_v61, %v929_v61  ;;  %1981 = vst.msk [vmem:[%s4094_s9 + $0x1a0] sm:$0xff] %vm1928_vm2, %v1241_v62  ;;  %v932_v7 = vadd.f32 %v3423_v41, %v931_v4  ;;  %v1244_v8 = vadd.f32 %v3428_v42, %v1243_v5 }
 0x18a   :  { %1918 = vst.msk [vmem:[%s4095_s8 + $0xd8] sm:$0xf] %vm1543_vm1, %v2388_v1  ;;  %v2389_v9 = vpack.c.bf16 %v940_v2, %v940_v2 }
 0x18b   :  { %1984 = vst.msk [vmem:[%s4094_s9 + $0x1b8] sm:$0xff] %vm1928_vm2, %v1252_v3  ;;  %v2387_v10 = vpack.c.bf16 %v932_v7, %v932_v7  ;;  %1982 = vst.msk [vmem:[%s4094_s9 + $0x1a8] sm:$0xff] %vm1928_vm2, %v1244_v8 }
 0x18c   :  { %1916 = vst.msk [vmem:[%s4095_s8 + $0xd0] sm:$0xf] %vm1543_vm1, %v2386_v6  ;;  %1919 = vst.msk [vmem:[%s4095_s8 + $0xdc] sm:$0xf] %vm1543_vm1, %v2389_v9 }
 0x18d   :  { %1917 = vst.msk [vmem:[%s4095_s8 + $0xd4] sm:$0xf] %vm1543_vm1, %v2387_v10  ;;  %v2630_v11 = vpop.f32.mrb[88].mxu1  ;;  %v2698_v12 = vpop.f32.mrb[88].mxu0 }
 0x18e   :  { %v953_v13 = vadd.f32 %v2630_v11, %v3423_v41  ;;  %v1265_v14 = vadd.f32 %v2698_v12, %v3428_v42  ;;  %v944_v15 = vpop.f32.mrb[89].mxu1  ;;  %v1256_v16 = vpop.f32.mrb[89].mxu0 }
 0x18f   :  { %v945_v17 = vadd.f32 %v3423_v41, %v944_v15  ;;  %v1257_v18 = vadd.f32 %v3428_v42, %v1256_v16  ;;  %v2631_v19 = vpop.f32.mrb[90].mxu1  ;;  %v2699_v20 = vpop.f32.mrb[90].mxu0 }
 0x190   :  { %v2392_v21 = vpack.c.bf16 %v953_v13, %v953_v13  ;;  %1987 = vst.msk [vmem:[%s4094_s9 + $0x1d0] sm:$0xff] %vm1928_vm2, %v1265_v14  ;;  %v956_v22 = vadd.f32 %v2631_v19, %v3423_v41  ;;  %v1268_v23 = vadd.f32 %v2699_v20, %v3428_v42  ;;  %v947_v24 = vpop.f32.mrb[91].mxu1  ;;  %v1259_v25 = vpop.f32.mrb[91].mxu0 }
 0x191   :  { %v2390_v26 = vpack.c.bf16 %v945_v17, %v945_v17  ;;  %1985 = vst.msk [vmem:[%s4094_s9 + $0x1c0] sm:$0xff] %vm1928_vm2, %v1257_v18  ;;  %v948_v27 = vadd.f32 %v3423_v41, %v947_v24  ;;  %v1260_v28 = vadd.f32 %v3428_v42, %v1259_v25 }
 0x192   :  { %1922 = vst.msk [vmem:[%s4095_s8 + $0xe8] sm:$0xf] %vm1543_vm1, %v2392_v21  ;;  %v2393_v29 = vpack.c.bf16 %v956_v22, %v956_v22 }
 0x193   :  { %1988 = vst.msk [vmem:[%s4094_s9 + $0x1d8] sm:$0xff] %vm1928_vm2, %v1268_v23  ;;  %v2391_v30 = vpack.c.bf16 %v948_v27, %v948_v27  ;;  %1986 = vst.msk [vmem:[%s4094_s9 + $0x1c8] sm:$0xff] %vm1928_vm2, %v1260_v28 }
 0x194   :  { %1920 = vst.msk [vmem:[%s4095_s8 + $0xe0] sm:$0xf] %vm1543_vm1, %v2390_v26  ;;  %1923 = vst.msk [vmem:[%s4095_s8 + $0xec] sm:$0xf] %vm1543_vm1, %v2393_v29 }
 0x195   :  { %1921 = vst.msk [vmem:[%s4095_s8 + $0xe4] sm:$0xf] %vm1543_vm1, %v2391_v30  ;;  %v2634_v31 = vpop.f32.mrb[92].mxu1  ;;  %v2702_v32 = vpop.f32.mrb[92].mxu0 }
 0x196   :  { %v969_v33 = vadd.f32 %v2634_v31, %v3423_v41  ;;  %v1281_v34 = vadd.f32 %v2702_v32, %v3428_v42  ;;  %v960_v35 = vpop.f32.mrb[93].mxu1  ;;  %v1272_v36 = vpop.f32.mrb[93].mxu0 }
 0x197   :  { %v961_v37 = vadd.f32 %v3423_v41, %v960_v35  ;;  %v1273_v39 = vadd.f32 %v3428_v42, %v1272_v36  ;;  %v2635_v38 = vpop.f32.mrb[94].mxu1  ;;  %v2703_v40 = vpop.f32.mrb[94].mxu0 }
 0x198   :  { %v2396_v43 = vpack.c.bf16 %v969_v33, %v969_v33  ;;  %1991 = vst.msk [vmem:[%s4094_s9 + $0x1f0] sm:$0xff] %vm1928_vm2, %v1281_v34  ;;  %v972_v44 = vadd.f32 %v2635_v38, %v3423_v41  ;;  %v1284_v45 = vadd.f32 %v2703_v40, %v3428_v42  ;;  %v963_v46 = vpop.f32.mrb[95].mxu1  ;;  %v1275_v47 = vpop.f32.mrb[95].mxu0 }
 0x199   :  { %v2394_v48 = vpack.c.bf16 %v961_v37, %v961_v37  ;;  %1989 = vst.msk [vmem:[%s4094_s9 + $0x1e0] sm:$0xff] %vm1928_vm2, %v1273_v39  ;;  %v964_v49 = vadd.f32 %v3423_v41, %v963_v46  ;;  %v1276_v50 = vadd.f32 %v3428_v42, %v1275_v47 }
 0x19a   :  { %1926 = vst.msk [vmem:[%s4095_s8 + $0xf8] sm:$0xf] %vm1543_vm1, %v2396_v43  ;;  %v2397_v51 = vpack.c.bf16 %v972_v44, %v972_v44 }
 0x19b   :  { %1992 = vst.msk [vmem:[%s4094_s9 + $0x1f8] sm:$0xff] %vm1928_vm2, %v1284_v45  ;;  %v2395_v52 = vpack.c.bf16 %v964_v49, %v964_v49  ;;  %1990 = vst.msk [vmem:[%s4094_s9 + $0x1e8] sm:$0xff] %vm1928_vm2, %v1276_v50 }
 0x19c   :  { %1924 = vst.msk [vmem:[%s4095_s8 + $0xf0] sm:$0xf] %vm1543_vm1, %v2394_v48  ;;  %1927 = vst.msk [vmem:[%s4095_s8 + $0xfc] sm:$0xf] %vm1543_vm1, %v2397_v51 }
 0x19d   :  { %1925 = vst.msk [vmem:[%s4095_s8 + $0xf4] sm:$0xf] %vm1543_vm1, %v2395_v52 }

</bundles_post_ra>
